<compile_context>
chip_gen: v5e
topology: v5e:2x2
jax: 0.10.0
libtpu: 0.0.40
codegen_flags: <defaults>
</compile_context>

<pallas_src>
import jax
import jax.numpy as jnp
from jax.experimental import pallas as pl
from jax.experimental.pallas import tpu as pltpu

STATE_DIM = 16
ACTION_DIM = 3
MAX_ACTION = 1.0
H1, H2, H3 = 400, 300, 200
# Lane-padded widths (multiples of 128).
H1P, H2P, H3P, OUTP = 512, 384, 256, 128
BN_EPS = 1e-5
LEAKY_SLOPE = 0.01  # F.leaky_relu default

# ---------------------------------------------------------------------------
# Packed weight buffer layout (bf16, shape (912, 512)).  All row offsets are
# multiples of 16 and all column offsets multiples of 128, so every view is
# aligned to bf16 (16,128) tiles.
#   w1 : rows [  0,  16), cols [  0, 512)   (STATE_DIM x H1P)
#   w2 : rows [ 16, 528), cols [  0, 384)   (H1P      x H2P)
#   w4 : rows [ 16, 272), cols [384, 512)   (H3P      x OUTP)   <- in w2's pad
#   w3 : rows [528, 912), cols [  0, 256)   (H2P      x H3P)
# ---------------------------------------------------------------------------
W1_R0, W1_R1 = 0, STATE_DIM          # 0 .. 16
W2_R0, W2_R1 = 16, 16 + H1P          # 16 .. 528
W4_R0, W4_R1 = 16, 16 + H3P          # 16 .. 272
W3_R0, W3_R1 = W2_R1, W2_R1 + H2P    # 528 .. 912
WBUF_ROWS = W3_R1                    # 912
WBUF_COLS = H1P                      # 512


def _leaky_relu(x):
    return jnp.where(x > 0, x, LEAKY_SLOPE * x)


def _batch_norm(x, gamma, beta):
    # training-mode BatchNorm1d: batch mean, biased batch variance
    mean = jnp.mean(x, axis=0, keepdims=True)
    var = jnp.mean((x - mean) * (x - mean), axis=0, keepdims=True)
    return (x - mean) * jax.lax.rsqrt(var + BN_EPS) * gamma + beta


def actor_kernel(x_ref, w_ref, vec_ref, out_ref):
    # x: (B, STATE_DIM) f32; w: (912, 512) bf16 packed; vec: (8, 512) f32.
    # Small per-feature vectors: one row each of the f32 vec block.
    b1 = vec_ref[0:1, :H1P]
    b2 = vec_ref[1:2, :H2P]
    g1 = vec_ref[2:3, :H2P]
    be1 = vec_ref[3:4, :H2P]
    b3 = vec_ref[4:5, :H3P]
    b4 = vec_ref[5:6, :OUTP]
    g2 = vec_ref[6:7, :OUTP]
    be2 = vec_ref[7:8, :OUTP]

    # Static, tile-aligned views into the single packed bf16 weight buffer.
    w1 = w_ref[W1_R0:W1_R1, :]                 # (16, 512)
    w2 = w_ref[W2_R0:W2_R1, 0:H2P]             # (512, 384)
    w3 = w_ref[W3_R0:W3_R1, 0:H3P]             # (384, 256)
    w4 = w_ref[W4_R0:W4_R1, H2P:H2P + OUTP]    # (256, 128)

    # fc1 + leaky_relu — LHS kept in f32 (w1 is tiny; closer to f32 Linear).
    a = jnp.dot(x_ref[...], w1.astype(jnp.float32),
                preferred_element_type=jnp.float32) + b1
    a = _leaky_relu(a)

    # fc2 + leaky_relu  (bf16 MXU inputs, f32 accumulate)
    a = jnp.dot(a.astype(jnp.bfloat16), w2,
                preferred_element_type=jnp.float32) + b2
    a = _leaky_relu(a)

    # bn1 (training-mode batch statistics; padded lanes are exactly 0)
    a = _batch_norm(a, g1, be1)

    # fc3 + leaky_relu
    a = jnp.dot(a.astype(jnp.bfloat16), w3,
                preferred_element_type=jnp.float32) + b3
    a = _leaky_relu(a)

    # fc4
    a = jnp.dot(a.astype(jnp.bfloat16), w4,
                preferred_element_type=jnp.float32) + b4

    # bn2 -> tanh (-> * max_action only if it isn't 1.0)
    a = _batch_norm(a, g2, be2)
    a = jnp.tanh(a)
    if MAX_ACTION != 1.0:
        a = a * MAX_ACTION
    out_ref[...] = a


@jax.jit
def actor_forward_padded(x, wbuf, vecs):
    """Returns the lane-padded (B, 128) output; slice [:, :ACTION_DIM] at the
    final consumer (kept out of this jit on purpose)."""
    batch = x.shape[0]
    vmem = pl.BlockSpec(memory_space=pltpu.MemorySpace.VMEM)
    return pl.pallas_call(
        actor_kernel,
        out_shape=jax.ShapeDtypeStruct((batch, OUTP), jnp.float32),
        in_specs=[vmem, vmem, vmem],
        out_specs=vmem,
    )(x, wbuf, vecs)


# ----------------------------------------------------------------------------
# Parameter construction (PyTorch-style logical params + packed form)
# ----------------------------------------------------------------------------
def xavier_normal(key, fan_in, fan_out):
    # nn.init.xavier_normal_ on a (out, in) weight; stored here as (in, out).
    std = (2.0 / (fan_in + fan_out)) ** 0.5
    return std * jax.random.normal(key, (fan_in, fan_out), dtype=jnp.float32)


def make_params(key):
    k1, k2, k3, k4, kb1, kb2, kb3, kb4 = jax.random.split(key, 8)
    w1 = xavier_normal(k1, STATE_DIM, H1)
    b1 = 0.1 * jax.random.normal(kb1, (1, H1), dtype=jnp.float32)
    w2 = xavier_normal(k2, H1, H2)
    b2 = 0.1 * jax.random.normal(kb2, (1, H2), dtype=jnp.float32)
    g1 = jnp.ones((1, H2), jnp.float32)        # bn1 weight = 1
    be1 = jnp.zeros((1, H2), jnp.float32)      # bn1 bias   = 0
    w3 = xavier_normal(k3, H2, H3)
    b3 = 0.1 * jax.random.normal(kb3, (1, H3), dtype=jnp.float32)
    w4 = xavier_normal(k4, H3, ACTION_DIM)
    b4 = 0.1 * jax.random.normal(kb4, (1, ACTION_DIM), dtype=jnp.float32)
    g2 = jnp.ones((1, ACTION_DIM), jnp.float32)    # bn2 weight = 1
    be2 = jnp.zeros((1, ACTION_DIM), jnp.float32)  # bn2 bias  = 0
    return (w1, b1, w2, b2, g1, be1, w3, b3, w4, b4, g2, be2)


def pack_params(params):
    """Pack all weights into one tile-aligned bf16 buffer, and all small
    vectors (biases, BN gammas/betas) into one (8, 512) f32 block.  Padding is
    strictly zero everywhere."""
    (w1, b1, w2, b2, g1, be1, w3, b3, w4, b4, g2, be2) = params

    wbuf = jnp.zeros((WBUF_ROWS, WBUF_COLS), jnp.float32)
    wbuf = wbuf.at[W1_R0:W1_R0 + w1.shape[0], 0:w1.shape[1]].set(w1)
    wbuf = wbuf.at[W2_R0:W2_R0 + w2.shape[0], 0:w2.shape[1]].set(w2)
    wbuf = wbuf.at[W3_R0:W3_R0 + w3.shape[0], 0:w3.shape[1]].set(w3)
    wbuf = wbuf.at[W4_R0:W4_R0 + w4.shape[0], H2P:H2P + w4.shape[1]].set(w4)
    wbuf = wbuf.astype(jnp.bfloat16)

    def pad_v(v):
        out = jnp.zeros((WBUF_COLS,), jnp.float32)
        return out.at[: v.shape[-1]].set(v.reshape(-1))

    vecs = jnp.stack([pad_v(b1), pad_v(b2), pad_v(g1), pad_v(be1),
                      pad_v(b3), pad_v(b4), pad_v(g2), pad_v(be2)])  # (8, 512)
    return wbuf, vecs


# ----------------------------------------------------------------------------
# Pure-JAX reference with identical numerics (f32 LHS for fc1 with
# bf16-rounded w1, bf16 matmul inputs with f32 accumulation afterwards,
# f32 BN/tanh) for validation.
# ----------------------------------------------------------------------------
def reference_forward(x, params):
    (w1, b1, w2, b2, g1, be1, w3, b3, w4, b4, g2, be2) = params

    def mm_bf16(a, w):
        return jnp.dot(a.astype(jnp.bfloat16), w.astype(jnp.bfloat16),
                       preferred_element_type=jnp.float32)

    a = jnp.dot(x, w1.astype(jnp.bfloat16).astype(jnp.float32),
                preferred_element_type=jnp.float32) + b1
    a = _leaky_relu(a)
    a = _leaky_relu(mm_bf16(a, w2) + b2)
    a = _batch_norm(a, g1, be1)
    a = _leaky_relu(mm_bf16(a, w3) + b3)
    a = _batch_norm(mm_bf16(a, w4) + b4, g2, be2)
    return jnp.tanh(a) * MAX_ACTION


if __name__ == "__main__":
    key = jax.random.PRNGKey(0)
    kx, kp = jax.random.split(key)

    batch = 8
    x = jax.random.normal(kx, (batch, STATE_DIM), dtype=jnp.float32)
    params = make_params(kp)
    wbuf, vecs = pack_params(params)

    out_padded = jax.block_until_ready(actor_forward_padded(x, wbuf, vecs))
    # Final-consumer slice (kept outside the jitted wrapper on purpose).
    out = out_padded[:, :ACTION_DIM]

    ref = reference_forward(x, params)
    assert out.shape == (batch, ACTION_DIM)
    max_err = jnp.max(jnp.abs(out - ref))
    assert jnp.allclose(out, ref, atol=2e-3, rtol=2e-3), (
        f"mismatch: max abs err {max_err}")
    # Padded lanes must come out exactly zero (zero weights/bias/gamma/beta).
    assert jnp.all(out_padded[:, ACTION_DIM:] == 0.0)

    print("KERNEL_OK")
</pallas_src>

<mosaic_0001>
module attributes {stable_mosaic.version = 11 : i64} {
  func.func @actor_kernel(%arg0: memref<8x16xf32, #tpu.memory_space<vmem>>, %arg1: memref<912x512xbf16, #tpu.memory_space<vmem>>, %arg2: memref<8x512xf32, #tpu.memory_space<vmem>>, %arg3: memref<8x128xf32, #tpu.memory_space<vmem>>) attributes {dimension_semantics = [], scalar_prefetch = 0 : i64, scratch_operands = 0 : i64, tpu.core_type = #tpu.core_type<tc>} {
    %c0 = arith.constant 0 : index
    %c0_0 = arith.constant 0 : index
    %0 = vector.load %arg2[%c0, %c0_0] : memref<8x512xf32, #tpu.memory_space<vmem>>, vector<1x512xf32>
    %c1 = arith.constant 1 : index
    %c0_1 = arith.constant 0 : index
    %1 = vector.load %arg2[%c1, %c0_1] : memref<8x512xf32, #tpu.memory_space<vmem>>, vector<1x384xf32>
    %c2 = arith.constant 2 : index
    %c0_2 = arith.constant 0 : index
    %2 = vector.load %arg2[%c2, %c0_2] : memref<8x512xf32, #tpu.memory_space<vmem>>, vector<1x384xf32>
    %c3 = arith.constant 3 : index
    %c0_3 = arith.constant 0 : index
    %3 = vector.load %arg2[%c3, %c0_3] : memref<8x512xf32, #tpu.memory_space<vmem>>, vector<1x384xf32>
    %c4 = arith.constant 4 : index
    %c0_4 = arith.constant 0 : index
    %4 = vector.load %arg2[%c4, %c0_4] : memref<8x512xf32, #tpu.memory_space<vmem>>, vector<1x256xf32>
    %c5 = arith.constant 5 : index
    %c0_5 = arith.constant 0 : index
    %5 = vector.load %arg2[%c5, %c0_5] : memref<8x512xf32, #tpu.memory_space<vmem>>, vector<1x128xf32>
    %c6 = arith.constant 6 : index
    %c0_6 = arith.constant 0 : index
    %6 = vector.load %arg2[%c6, %c0_6] : memref<8x512xf32, #tpu.memory_space<vmem>>, vector<1x128xf32>
    %c7 = arith.constant 7 : index
    %c0_7 = arith.constant 0 : index
    %7 = vector.load %arg2[%c7, %c0_7] : memref<8x512xf32, #tpu.memory_space<vmem>>, vector<1x128xf32>
    %c0_8 = arith.constant 0 : index
    %c0_9 = arith.constant 0 : index
    %8 = vector.load %arg1[%c0_8, %c0_9] : memref<912x512xbf16, #tpu.memory_space<vmem>>, vector<16x512xbf16>
    %c16 = arith.constant 16 : index
    %c0_10 = arith.constant 0 : index
    %9 = vector.load %arg1[%c16, %c0_10] : memref<912x512xbf16, #tpu.memory_space<vmem>>, vector<512x384xbf16>
    %c528 = arith.constant 528 : index
    %c0_11 = arith.constant 0 : index
    %10 = vector.load %arg1[%c528, %c0_11] : memref<912x512xbf16, #tpu.memory_space<vmem>>, vector<384x256xbf16>
    %c16_12 = arith.constant 16 : index
    %c384 = arith.constant 384 : index
    %11 = vector.load %arg1[%c16_12, %c384] : memref<912x512xbf16, #tpu.memory_space<vmem>>, vector<256x128xbf16>
    %c0_13 = arith.constant 0 : index
    %c0_14 = arith.constant 0 : index
    %12 = vector.load %arg0[%c0_13, %c0_14] : memref<8x16xf32, #tpu.memory_space<vmem>>, vector<8x16xf32>
    %13 = arith.extf %8 : vector<16x512xbf16> to vector<16x512xf32>
    %cst = arith.constant dense<0.000000e+00> : vector<8x512xf32>
    %14 = tpu.matmul %12, %13, %cst {dimension_numbers = #tpu.dot_dimension_numbers<[1], [0], [0], [1], [0, 0, 1, 1], [], []>} : vector<8x16xf32>, vector<16x512xf32>, vector<8x512xf32> -> vector<8x512xf32>
    %15 = vector.broadcast %0 : vector<1x512xf32> to vector<8x512xf32>
    %16 = arith.addf %14, %15 : vector<8x512xf32>
    %cst_15 = arith.constant 0.000000e+00 : f32
    %17 = vector.broadcast %cst_15 : f32 to vector<8x512xf32>
    %18 = arith.cmpf ogt, %16, %17 : vector<8x512xf32>
    %cst_16 = arith.constant 0.00999999977 : f32
    %19 = vector.broadcast %cst_16 : f32 to vector<8x512xf32>
    %20 = arith.mulf %19, %16 : vector<8x512xf32>
    %21 = arith.select %18, %16, %20 : vector<8x512xi1>, vector<8x512xf32>
    %22 = arith.truncf %21 : vector<8x512xf32> to vector<8x512xbf16>
    %cst_17 = arith.constant dense<0.000000e+00> : vector<8x384xf32>
    %23 = tpu.matmul %22, %9, %cst_17 {dimension_numbers = #tpu.dot_dimension_numbers<[1], [0], [0], [1], [0, 0, 1, 1], [], []>} : vector<8x512xbf16>, vector<512x384xbf16>, vector<8x384xf32> -> vector<8x384xf32>
    %24 = vector.broadcast %1 : vector<1x384xf32> to vector<8x384xf32>
    %25 = arith.addf %23, %24 : vector<8x384xf32>
    %cst_18 = arith.constant 0.000000e+00 : f32
    %26 = vector.broadcast %cst_18 : f32 to vector<8x384xf32>
    %27 = arith.cmpf ogt, %25, %26 : vector<8x384xf32>
    %cst_19 = arith.constant 0.00999999977 : f32
    %28 = vector.broadcast %cst_19 : f32 to vector<8x384xf32>
    %29 = arith.mulf %28, %25 : vector<8x384xf32>
    %30 = arith.select %27, %25, %29 : vector<8x384xi1>, vector<8x384xf32>
    %cst_20 = arith.constant dense<0.000000e+00> : vector<384xf32>
    %31 = vector.multi_reduction <add>, %30, %cst_20 [0] : vector<8x384xf32> to vector<384xf32>
    %32 = vector.shape_cast %31 : vector<384xf32> to vector<1x384xf32>
    %cst_21 = arith.constant 8.000000e+00 : f32
    %33 = vector.broadcast %cst_21 : f32 to vector<1x384xf32>
    %34 = arith.divf %32, %33 : vector<1x384xf32>
    %35 = vector.broadcast %34 : vector<1x384xf32> to vector<8x384xf32>
    %36 = arith.subf %30, %35 : vector<8x384xf32>
    %37 = vector.broadcast %34 : vector<1x384xf32> to vector<8x384xf32>
    %38 = arith.subf %30, %37 : vector<8x384xf32>
    %39 = arith.mulf %36, %38 : vector<8x384xf32>
    %cst_22 = arith.constant dense<0.000000e+00> : vector<384xf32>
    %40 = vector.multi_reduction <add>, %39, %cst_22 [0] : vector<8x384xf32> to vector<384xf32>
    %41 = vector.shape_cast %40 : vector<384xf32> to vector<1x384xf32>
    %cst_23 = arith.constant 8.000000e+00 : f32
    %42 = vector.broadcast %cst_23 : f32 to vector<1x384xf32>
    %43 = arith.divf %41, %42 : vector<1x384xf32>
    %44 = vector.broadcast %34 : vector<1x384xf32> to vector<8x384xf32>
    %45 = arith.subf %30, %44 : vector<8x384xf32>
    %cst_24 = arith.constant 9.99999974E-6 : f32
    %46 = vector.broadcast %cst_24 : f32 to vector<1x384xf32>
    %47 = arith.addf %43, %46 : vector<1x384xf32>
    %48 = math.rsqrt %47 : vector<1x384xf32>
    %49 = vector.broadcast %48 : vector<1x384xf32> to vector<8x384xf32>
    %50 = arith.mulf %45, %49 : vector<8x384xf32>
    %51 = vector.broadcast %2 : vector<1x384xf32> to vector<8x384xf32>
    %52 = arith.mulf %50, %51 : vector<8x384xf32>
    %53 = vector.broadcast %3 : vector<1x384xf32> to vector<8x384xf32>
    %54 = arith.addf %52, %53 : vector<8x384xf32>
    %55 = arith.truncf %54 : vector<8x384xf32> to vector<8x384xbf16>
    %cst_25 = arith.constant dense<0.000000e+00> : vector<8x256xf32>
    %56 = tpu.matmul %55, %10, %cst_25 {dimension_numbers = #tpu.dot_dimension_numbers<[1], [0], [0], [1], [0, 0, 1, 1], [], []>} : vector<8x384xbf16>, vector<384x256xbf16>, vector<8x256xf32> -> vector<8x256xf32>
    %57 = vector.broadcast %4 : vector<1x256xf32> to vector<8x256xf32>
    %58 = arith.addf %56, %57 : vector<8x256xf32>
    %cst_26 = arith.constant 0.000000e+00 : f32
    %59 = vector.broadcast %cst_26 : f32 to vector<8x256xf32>
    %60 = arith.cmpf ogt, %58, %59 : vector<8x256xf32>
    %cst_27 = arith.constant 0.00999999977 : f32
    %61 = vector.broadcast %cst_27 : f32 to vector<8x256xf32>
    %62 = arith.mulf %61, %58 : vector<8x256xf32>
    %63 = arith.select %60, %58, %62 : vector<8x256xi1>, vector<8x256xf32>
    %64 = arith.truncf %63 : vector<8x256xf32> to vector<8x256xbf16>
    %cst_28 = arith.constant dense<0.000000e+00> : vector<8x128xf32>
    %65 = tpu.matmul %64, %11, %cst_28 {dimension_numbers = #tpu.dot_dimension_numbers<[1], [0], [0], [1], [0, 0, 1, 1], [], []>} : vector<8x256xbf16>, vector<256x128xbf16>, vector<8x128xf32> -> vector<8x128xf32>
    %66 = vector.broadcast %5 : vector<1x128xf32> to vector<8x128xf32>
    %67 = arith.addf %65, %66 : vector<8x128xf32>
    %cst_29 = arith.constant dense<0.000000e+00> : vector<128xf32>
    %68 = vector.multi_reduction <add>, %67, %cst_29 [0] : vector<8x128xf32> to vector<128xf32>
    %69 = vector.shape_cast %68 : vector<128xf32> to vector<1x128xf32>
    %cst_30 = arith.constant 8.000000e+00 : f32
    %70 = vector.broadcast %cst_30 : f32 to vector<1x128xf32>
    %71 = arith.divf %69, %70 : vector<1x128xf32>
    %72 = vector.broadcast %71 : vector<1x128xf32> to vector<8x128xf32>
    %73 = arith.subf %67, %72 : vector<8x128xf32>
    %74 = vector.broadcast %71 : vector<1x128xf32> to vector<8x128xf32>
    %75 = arith.subf %67, %74 : vector<8x128xf32>
    %76 = arith.mulf %73, %75 : vector<8x128xf32>
    %cst_31 = arith.constant dense<0.000000e+00> : vector<128xf32>
    %77 = vector.multi_reduction <add>, %76, %cst_31 [0] : vector<8x128xf32> to vector<128xf32>
    %78 = vector.shape_cast %77 : vector<128xf32> to vector<1x128xf32>
    %cst_32 = arith.constant 8.000000e+00 : f32
    %79 = vector.broadcast %cst_32 : f32 to vector<1x128xf32>
    %80 = arith.divf %78, %79 : vector<1x128xf32>
    %81 = vector.broadcast %71 : vector<1x128xf32> to vector<8x128xf32>
    %82 = arith.subf %67, %81 : vector<8x128xf32>
    %cst_33 = arith.constant 9.99999974E-6 : f32
    %83 = vector.broadcast %cst_33 : f32 to vector<1x128xf32>
    %84 = arith.addf %80, %83 : vector<1x128xf32>
    %85 = math.rsqrt %84 : vector<1x128xf32>
    %86 = vector.broadcast %85 : vector<1x128xf32> to vector<8x128xf32>
    %87 = arith.mulf %82, %86 : vector<8x128xf32>
    %88 = vector.broadcast %6 : vector<1x128xf32> to vector<8x128xf32>
    %89 = arith.mulf %87, %88 : vector<8x128xf32>
    %90 = vector.broadcast %7 : vector<1x128xf32> to vector<8x128xf32>
    %91 = arith.addf %89, %90 : vector<8x128xf32>
    %92 = math.tanh %91 : vector<8x128xf32>
    %c0_34 = arith.constant 0 : index
    %c0_35 = arith.constant 0 : index
    %93 = vector.load %arg3[%c0_34, %c0_35] : memref<8x128xf32, #tpu.memory_space<vmem>>, vector<8x128xf32>
    tpu.vector_store %arg3[%c0_34, %c0_35], %92 {strides = array<i32>} : memref<8x128xf32, #tpu.memory_space<vmem>>, vector<8x128xf32>,
    return
  }
}

</mosaic_0001>

<bundles_post_ra>
// kernel: actor_forward_padded.1
= control target key start
LH: loop header
LB: loop body
LE: loop exit
PB: predicated region body
PF: predicated region fallthrough
CT: control target
= control target key end

     0   :  { %8 = vsyncpa [#allocation3], 0  ;;  %s2756_s0 = inlined_call_operand.hbm [shape: f32[8,16], index: 0, kind: input, shape index: {}]   ;;  %s2757_s1 = inlined_call_operand.hbm [shape: bf16[912,512], index: 1, kind: input, shape index: {}]   ;;  %s2758_s2 = inlined_call_operand.hbm [shape: f32[8,512], index: 2, kind: input, shape index: {}]   ;;  %s2759_s3 = inlined_call_operand.hbm [shape: f32[8,128], index: 3, kind: output, shape index: {}]  }
   0x1   :  { %9 = vsyncpa [#allocation6], 0  ;;  %s26_s14 = sshll.u32 %s2757_s1, 4  ;;  %s27_s14 = int_to_ptr.hbm [resolvable:$true] %s26_s14 }
   0x2   :  { %10 = vsyncpa [#allocation4], 0  ;;  %s2626_s15 = smov [#allocation5]   ;;  %s16_s19 = sshll.u32 %s2756_s0, 4  ;;  %s17_s19 = int_to_ptr.hbm [resolvable:$true] %s16_s19 }
   0x3   :  { %s28_s16 = sshll.u32 %s2626_s15, 4  ;;  %s2627_s20 = smov 256   ;;  %s29_s16 = int_to_ptr.vmem [resolvable:$true] %s28_s16 }
   0x4   :  { %s2628_s21 = smov 16   ;;  %s2629_s22 = smov [#allocation2]  }
   0x5   :  { %34 = dma.hbm_to_vmem [thread:$0]  %s27_s14, 29184, %s29_s16, [#allocation6], %s2627_s20, %s2627_s20, %s2628_s21  }
   0x6   :  { %s18_s23 = sshll.u32 %s2629_s22, 4  ;;  %s40_s26 = sshll.u32 %s2758_s2, 4  ;;  %s19_s23 = int_to_ptr.vmem [resolvable:$true] %s18_s23  ;;  %s41_s26 = int_to_ptr.hbm [resolvable:$true] %s40_s26 }
   0x7   :  { %21 = dma.hbm_to_vmem [thread:$0]  %s17_s19, 128, %s19_s23, [#allocation3]  }
   0x8   :  { %s2630_s1 = smov [#allocation7]  }
   0x9   :  { %s42_s27 = sshll.u32 %s2630_s1, 4  ;;  %s43_s27 = int_to_ptr.vmem [resolvable:$true] %s42_s27 }
   0xa   :  { %45 = dma.hbm_to_vmem [thread:$0]  %s41_s26, 512, %s43_s27, [#allocation6]  }
   0xb   :  { %2620 = dma.done.wait [#allocation3], 128  }
   0xc   :  { %2621 = vsyncadd [#allocation3], 4294967168 }
   0xd   :  { %2622 = dma.done.wait [#allocation6], 29696  }
   0xe   :  { %2623 = vsyncadd [#allocation6], 4294937600  ;;  %v72_v0 = vld [vmem:[#allocation5 + $0x10] sm:$0xff]  ;;  %v73_v1 = vld [vmem:[#allocation5 + $0x18] sm:$0xff]  ;;  %vm300_vm0 = vcmask 130048   ;;  %s2632_s0 = smov [#allocation8]  }
   0xf   :  { %v70_v2 = vld [vmem:[#allocation5] sm:$0xff]  ;;  %v287_v3 = vunpack.c.l.bf16 %v72_v0  ;;  %v288_v4 = vunpack.c.h.bf16 %v72_v0  ;;  %v289_v5 = vunpack.c.l.bf16 %v73_v1  ;;  %v290_v6 = vunpack.c.h.bf16 %v73_v1  ;;  %v71_v7 = vld [vmem:[#allocation5 + $0x8] sm:$0xff]  ;;  %v2367_v13 = vld [vmem:[#allocation5 + $0x10c] sm:$0xf0]  ;;  %s1688_s2 = sshll.u32 %s2632_s0, 4  ;;  %s1690_s30 = sshll.u32 %s2759_s3, 4  ;;  %s1689_s2 = int_to_ptr.vmem [resolvable:$true] %s1688_s2  ;;  %s1691_s30 = int_to_ptr.hbm [resolvable:$true] %s1690_s30 }
  0x10   :  { %v1791_v8 = vld [vmem:[#allocation5 + $0x100] sm:$0xf]  ;;  %v283_v9 = vunpack.c.l.bf16 %v70_v2  ;;  %v284_v10 = vunpack.c.h.bf16 %v70_v2  ;;  %v285_v11 = vunpack.c.l.bf16 %v71_v7  ;;  %v286_v12 = vunpack.c.h.bf16 %v71_v7  ;;  %v2391_v15 = vld [vmem:[#allocation5 + $0x20c] sm:$0xf0]  ;;  %v282_v16 = vld [vmem:[#allocation2] sm:$0xff] }
  0x11   :  { %v1887_v14 = vld [vmem:[#allocation5 + $0x200] sm:$0xf]  ;;  %318 = vmatpush.msra.mxu0 %v287_v3  ;;  %338 = vmatpush.msra.mxu1 %v288_v4  ;;  %v2415_v18 = vld [vmem:[#allocation5 + $0x30c] sm:$0xf0]  ;;  %v1792_v19 = vor.u32 %v2367_v13, %v1791_v8 }
  0x12   :  { %358 = vmatpush.msra.mxu2 %v289_v5  ;;  %378 = vmatpush.msra.mxu3 %v290_v6  ;;  %v1983_v17 = vld [vmem:[#allocation5 + $0x300] sm:$0xf]  ;;  %v1888_v20 = vor.u32 %v2391_v15, %v1887_v14  ;;  %v2439_v23 = vld [vmem:[#allocation5 + $0x40c] sm:$0xf0] }
  0x13   :  { %319 = vmatpush.msra.mxu0 %v283_v9  ;;  %339 = vmatpush.msra.mxu1 %v284_v10  ;;  %v1779_v21 = vld [vmem:[#allocation5 + $0xe0] sm:$0xf]  ;;  %v2364_v24 = vld [vmem:[#allocation5 + $0xec] sm:$0xf0]  ;;  %v1984_v27 = vor.u32 %v2415_v18, %v1983_v17 }
  0x14   :  { %v2079_v22 = vld [vmem:[#allocation5 + $0x400] sm:$0xf]  ;;  %359 = vmatpush.msra.mxu2 %v285_v11  ;;  %379 = vmatpush.msra.mxu3 %v286_v12  ;;  %v2388_v26 = vld [vmem:[#allocation5 + $0x1ec] sm:$0xf0]  ;;  %v1780_v33 = vor.u32 %v2364_v24, %v1779_v21 }
  0x15   :  { %v1875_v25 = vld [vmem:[#allocation5 + $0x1e0] sm:$0xf]  ;;  %v2080_v28 = vor.u32 %v2439_v23, %v2079_v22  ;;  %1701 = vmatmul.msk.f32.vlgmr.msra.gmra.mxu0 %vm300_vm0, %v282_v16  ;;  %1702 = vmatmul.msk.f32.vlgmr.msra.gmra.mxu1 %vm300_vm0, %v282_v16  ;;  %v2412_v30 = vld [vmem:[#allocation5 + $0x2ec] sm:$0xf0] }
  0x16   :  { %v1971_v29 = vld [vmem:[#allocation5 + $0x2e0] sm:$0xf]  ;;  %1703 = vmatmul.msk.f32.vlgmr.msra.gmra.mxu2 %vm300_vm0, %v282_v16  ;;  %1704 = vmatmul.msk.f32.vlgmr.msra.gmra.mxu3 %vm300_vm0, %v282_v16  ;;  %v2436_v32 = vld [vmem:[#allocation5 + $0x3ec] sm:$0xf0]  ;;  %v1876_v34 = vor.u32 %v2388_v26, %v1875_v25 }
  0x17   :  { %v2067_v31 = vld [vmem:[#allocation5 + $0x3e0] sm:$0xf]  ;;  %919 = vmatpush.bf16.msrb.mxu0 %v1792_v19  ;;  %932 = vmatpush.bf16.msrb.mxu1 %v1888_v20  ;;  %v2361_v36 = vld [vmem:[#allocation5 + $0xcc] sm:$0xf0]  ;;  %v1972_v39 = vor.u32 %v2412_v30, %v1971_v29 }
  0x18   :  { %v1767_v35 = vld [vmem:[#allocation5 + $0xc0] sm:$0xf]  ;;  %945 = vmatpush.bf16.msrb.mxu2 %v1984_v27  ;;  %958 = vmatpush.bf16.msrb.mxu3 %v2080_v28  ;;  %v2385_v38 = vld [vmem:[#allocation5 + $0x1cc] sm:$0xf0]  ;;  %v2068_v40 = vor.u32 %v2436_v32, %v2067_v31 }
  0x19   :  { %v1863_v37 = vld [vmem:[#allocation5 + $0x1c0] sm:$0xf]  ;;  %v2409_v42 = vld [vmem:[#allocation5 + $0x2cc] sm:$0xf0]  ;;  %v1768_v45 = vor.u32 %v2361_v36, %v1767_v35  ;;  %v2366_v35 = vld [vmem:[#allocation5 + $0x104] sm:$0xf] }
  0x1a   :  { %v1959_v41 = vld [vmem:[#allocation5 + $0x2c0] sm:$0xf]  ;;  %v2433_v44 = vld [vmem:[#allocation5 + $0x3cc] sm:$0xf0]  ;;  %v1864_v46 = vor.u32 %v2385_v38, %v1863_v37  ;;  %v1793_v36 = vld [vmem:[#allocation5 + $0x110] sm:$0xf0] }
  0x1b   :  { %v2055_v43 = vld [vmem:[#allocation5 + $0x3c0] sm:$0xf]  ;;  %920 = vmatpush.bf16.msrb.mxu0 %v1780_v33  ;;  %933 = vmatpush.bf16.msrb.mxu1 %v1876_v34  ;;  %v2358_v48 = vld [vmem:[#allocation5 + $0xac] sm:$0xf0]  ;;  %v1960_v51 = vor.u32 %v2409_v42, %v1959_v41  ;;  %v2390_v37 = vld [vmem:[#allocation5 + $0x204] sm:$0xf] }
  0x1c   :  { %v1755_v47 = vld [vmem:[#allocation5 + $0xa0] sm:$0xf]  ;;  %946 = vmatpush.bf16.msrb.mxu2 %v1972_v39  ;;  %959 = vmatpush.bf16.msrb.mxu3 %v2068_v40  ;;  %v2382_v50 = vld [vmem:[#allocation5 + $0x1ac] sm:$0xf0]  ;;  %v2056_v52 = vor.u32 %v2433_v44, %v2055_v43  ;;  %v1889_v40 = vld [vmem:[#allocation5 + $0x210] sm:$0xf0] }
  0x1d   :  { %v1851_v49 = vld [vmem:[#allocation5 + $0x1a0] sm:$0xf]  ;;  %v2406_v54 = vld [vmem:[#allocation5 + $0x2ac] sm:$0xf0]  ;;  %v1756_v57 = vor.u32 %v2358_v48, %v1755_v47  ;;  %v1985_v48 = vld [vmem:[#allocation5 + $0x310] sm:$0xf0] }
  0x1e   :  { %v1947_v53 = vld [vmem:[#allocation5 + $0x2a0] sm:$0xf]  ;;  %v2430_v56 = vld [vmem:[#allocation5 + $0x3ac] sm:$0xf0]  ;;  %v1852_v58 = vor.u32 %v2382_v50, %v1851_v49  ;;  %v2438_v49 = vld [vmem:[#allocation5 + $0x404] sm:$0xf] }
  0x1f   :  { %v2043_v55 = vld [vmem:[#allocation5 + $0x3a0] sm:$0xf]  ;;  %921 = vmatpush.bf16.msrb.mxu0 %v1768_v45  ;;  %934 = vmatpush.bf16.msrb.mxu1 %v1864_v46  ;;  %v2355_v60 = vld [vmem:[#allocation5 + $0x8c] sm:$0xf0]  ;;  %v1948_v63 = vor.u32 %v2406_v54, %v1947_v53  ;;  %v2414_v45 = vld [vmem:[#allocation5 + $0x304] sm:$0xf] }
  0x20   :  { %v1743_v59 = vld [vmem:[#allocation5 + $0x80] sm:$0xf]  ;;  %947 = vmatpush.bf16.msrb.mxu2 %v1960_v51  ;;  %960 = vmatpush.bf16.msrb.mxu3 %v2056_v52  ;;  %v2379_v62 = vld [vmem:[#allocation5 + $0x18c] sm:$0xf0]  ;;  %v2044_v0 = vor.u32 %v2430_v56, %v2043_v55  ;;  %v2081_v50 = vld [vmem:[#allocation5 + $0x410] sm:$0xf0]  ;;  %v1796_v51 = vor.u32 %v2366_v35, %v1793_v36  ;;  %v1892_v52 = vor.u32 %v2390_v37, %v1889_v40 }
  0x21   :  { %v1839_v61 = vld [vmem:[#allocation5 + $0x180] sm:$0xf]  ;;  %v2403_v2 = vld [vmem:[#allocation5 + $0x28c] sm:$0xf0]  ;;  %v1744_v5 = vor.u32 %v2355_v60, %v1743_v59  ;;  %v2363_v53 = vld [vmem:[#allocation5 + $0xe4] sm:$0xf]  ;;  %v1988_v59 = vor.u32 %v2414_v45, %v1985_v48  ;;  %v2084_v60 = vor.u32 %v2438_v49, %v2081_v50 }
  0x22   :  { %v1935_v1 = vld [vmem:[#allocation5 + $0x280] sm:$0xf]  ;;  %v2427_v4 = vld [vmem:[#allocation5 + $0x38c] sm:$0xf0]  ;;  %v1840_v6 = vor.u32 %v2379_v62, %v1839_v61  ;;  %v1781_v54 = vld [vmem:[#allocation5 + $0xf0] sm:$0xf0] }
  0x23   :  { %v2031_v3 = vld [vmem:[#allocation5 + $0x380] sm:$0xf]  ;;  %922 = vmatpush.bf16.msrb.mxu0 %v1756_v57  ;;  %935 = vmatpush.bf16.msrb.mxu1 %v1852_v58  ;;  %v2352_v8 = vld [vmem:[#allocation5 + $0x6c] sm:$0xf0]  ;;  %v1936_v11 = vor.u32 %v2403_v2, %v1935_v1  ;;  %v2387_v55 = vld [vmem:[#allocation5 + $0x1e4] sm:$0xf]  ;;  %v1784_v1 = vor.u32 %v2363_v53, %v1781_v54 }
  0x24   :  { %v1731_v7 = vld [vmem:[#allocation5 + $0x60] sm:$0xf]  ;;  %948 = vmatpush.bf16.msrb.mxu2 %v1948_v63  ;;  %961 = vmatpush.bf16.msrb.mxu3 %v2044_v0  ;;  %v2376_v10 = vld [vmem:[#allocation5 + $0x16c] sm:$0xf0]  ;;  %v2032_v12 = vor.u32 %v2427_v4, %v2031_v3  ;;  %v1877_v56 = vld [vmem:[#allocation5 + $0x1f0] sm:$0xf0] }
  0x25   :  { %v1827_v9 = vld [vmem:[#allocation5 + $0x160] sm:$0xf]  ;;  %v2400_v14 = vld [vmem:[#allocation5 + $0x26c] sm:$0xf0]  ;;  %v1732_v17 = vor.u32 %v2352_v8, %v1731_v7  ;;  %v2411_v61 = vld [vmem:[#allocation5 + $0x2e4] sm:$0xf]  ;;  %v1880_v2 = vor.u32 %v2387_v55, %v1877_v56 }
  0x26   :  { %v1923_v13 = vld [vmem:[#allocation5 + $0x260] sm:$0xf]  ;;  %v2424_v16 = vld [vmem:[#allocation5 + $0x36c] sm:$0xf0]  ;;  %v1828_v18 = vor.u32 %v2376_v10, %v1827_v9  ;;  %v1973_v62 = vld [vmem:[#allocation5 + $0x2f0] sm:$0xf0] }
  0x27   :  { %v2019_v15 = vld [vmem:[#allocation5 + $0x360] sm:$0xf]  ;;  %923 = vmatpush.bf16.msrb.mxu0 %v1744_v5  ;;  %936 = vmatpush.bf16.msrb.mxu1 %v1840_v6  ;;  %v2349_v20 = vld [vmem:[#allocation5 + $0x4c] sm:$0xf0]  ;;  %v1924_v23 = vor.u32 %v2400_v14, %v1923_v13  ;;  %v2435_v63 = vld [vmem:[#allocation5 + $0x3e4] sm:$0xf]  ;;  %v1976_v7 = vor.u32 %v2411_v61, %v1973_v62 }
  0x28   :  { %v1719_v19 = vld [vmem:[#allocation5 + $0x40] sm:$0xf]  ;;  %949 = vmatpush.bf16.msrb.mxu2 %v1936_v11  ;;  %962 = vmatpush.bf16.msrb.mxu3 %v2032_v12  ;;  %v2373_v22 = vld [vmem:[#allocation5 + $0x14c] sm:$0xf0]  ;;  %v2020_v24 = vor.u32 %v2424_v16, %v2019_v15  ;;  %v2069_v0 = vld [vmem:[#allocation5 + $0x3f0] sm:$0xf0] }
  0x29   :  { %v1815_v21 = vld [vmem:[#allocation5 + $0x140] sm:$0xf]  ;;  %v2397_v26 = vld [vmem:[#allocation5 + $0x24c] sm:$0xf0]  ;;  %v1720_v30 = vor.u32 %v2349_v20, %v1719_v19  ;;  %v2360_v3 = vld [vmem:[#allocation5 + $0xc4] sm:$0xf]  ;;  %v2072_v8 = vor.u32 %v2435_v63, %v2069_v0 }
  0x2a   :  { %v1911_v25 = vld [vmem:[#allocation5 + $0x240] sm:$0xf]  ;;  %v2421_v28 = vld [vmem:[#allocation5 + $0x34c] sm:$0xf0]  ;;  %v1816_v31 = vor.u32 %v2373_v22, %v1815_v21  ;;  %v1769_v4 = vld [vmem:[#allocation5 + $0xd0] sm:$0xf0] }
  0x2b   :  { %v2007_v27 = vld [vmem:[#allocation5 + $0x340] sm:$0xf]  ;;  %924 = vmatpush.bf16.msrb.mxu0 %v1732_v17  ;;  %937 = vmatpush.bf16.msrb.mxu1 %v1828_v18  ;;  %v2346_v32 = vld [vmem:[#allocation5 + $0x2c] sm:$0xf0]  ;;  %v1912_v38 = vor.u32 %v2397_v26, %v1911_v25  ;;  %v2384_v5 = vld [vmem:[#allocation5 + $0x1c4] sm:$0xf]  ;;  %v1772_v13 = vor.u32 %v2360_v3, %v1769_v4 }
  0x2c   :  { %v1707_v29 = vld [vmem:[#allocation5 + $0x20] sm:$0xf]  ;;  %v2370_v34 = vld [vmem:[#allocation5 + $0x12c] sm:$0xf0]  ;;  %950 = vmatpush.bf16.msrb.mxu2 %v1924_v23  ;;  %963 = vmatpush.bf16.msrb.mxu3 %v2020_v24  ;;  %v2008_v39 = vor.u32 %v2421_v28, %v2007_v27  ;;  %v1865_v6 = vld [vmem:[#allocation5 + $0x1d0] sm:$0xf0] }
  0x2d   :  { %v1803_v33 = vld [vmem:[#allocation5 + $0x120] sm:$0xf]  ;;  %v2394_v42 = vld [vmem:[#allocation5 + $0x22c] sm:$0xf0]  ;;  %v1708_v46 = vor.u32 %v2346_v32, %v1707_v29  ;;  %v2408_v9 = vld [vmem:[#allocation5 + $0x2c4] sm:$0xf]  ;;  %v1868_v14 = vor.u32 %v2384_v5, %v1865_v6 }
  0x2e   :  { %v1899_v41 = vld [vmem:[#allocation5 + $0x220] sm:$0xf]  ;;  %v2418_v44 = vld [vmem:[#allocation5 + $0x32c] sm:$0xf0]  ;;  %v1804_v47 = vor.u32 %v2370_v34, %v1803_v33  ;;  %v1961_v10 = vld [vmem:[#allocation5 + $0x2d0] sm:$0xf0] }
  0x2f   :  { %v1995_v43 = vld [vmem:[#allocation5 + $0x320] sm:$0xf]  ;;  %925 = vmatpush.bf16.msrb.mxu0 %v1720_v30  ;;  %938 = vmatpush.bf16.msrb.mxu1 %v1816_v31  ;;  %v1900_v57 = vor.u32 %v2394_v42, %v1899_v41  ;;  %v2432_v11 = vld [vmem:[#allocation5 + $0x3c4] sm:$0xf]  ;;  %v2057_v12 = vld [vmem:[#allocation5 + $0x3d0] sm:$0xf0]  ;;  %v1964_v19 = vor.u32 %v2408_v9, %v1961_v10 }
  0x30   :  { %951 = vmatpush.bf16.msrb.mxu2 %v1912_v38  ;;  %964 = vmatpush.bf16.msrb.mxu3 %v2008_v39  ;;  %v1996_v58 = vor.u32 %v2418_v44, %v1995_v43  ;;  %v2357_v15 = vld [vmem:[#allocation5 + $0xa4] sm:$0xf]  ;;  %v1757_v16 = vld [vmem:[#allocation5 + $0xb0] sm:$0xf0]  ;;  %v2060_v20 = vor.u32 %v2432_v11, %v2057_v12 }
  0x31   :  { %v2381_v17 = vld [vmem:[#allocation5 + $0x1a4] sm:$0xf]  ;;  %v1853_v18 = vld [vmem:[#allocation5 + $0x1b0] sm:$0xf0]  ;;  %v1760_v25 = vor.u32 %v2357_v15, %v1757_v16 }
  0x32   :  { %v2405_v21 = vld [vmem:[#allocation5 + $0x2a4] sm:$0xf]  ;;  %v1949_v22 = vld [vmem:[#allocation5 + $0x2b0] sm:$0xf0]  ;;  %v1856_v26 = vor.u32 %v2381_v17, %v1853_v18 }
  0x33   :  { %926 = vmatpush.bf16.msrb.mxu0 %v1708_v46  ;;  %939 = vmatpush.bf16.msrb.mxu1 %v1804_v47  ;;  %v2429_v23 = vld [vmem:[#allocation5 + $0x3a4] sm:$0xf]  ;;  %v2045_v24 = vld [vmem:[#allocation5 + $0x3b0] sm:$0xf0]  ;;  %v1952_v31 = vor.u32 %v2405_v21, %v1949_v22  ;;  %v2368_v21 = vld [vmem:[#allocation5 + $0x114] sm:$0xf0] }
  0x34   :  { %952 = vmatpush.bf16.msrb.mxu2 %v1900_v57  ;;  %965 = vmatpush.bf16.msrb.mxu3 %v1996_v58  ;;  %v2354_v27 = vld [vmem:[#allocation5 + $0x84] sm:$0xf]  ;;  %v1745_v28 = vld [vmem:[#allocation5 + $0x90] sm:$0xf0]  ;;  %v2048_v32 = vor.u32 %v2429_v23, %v2045_v24  ;;  %v1895_v22 = vld [vmem:[#allocation5 + $0x208] sm:$0xf] }
  0x35   :  { %v2378_v29 = vld [vmem:[#allocation5 + $0x184] sm:$0xf]  ;;  %v1841_v30 = vld [vmem:[#allocation5 + $0x190] sm:$0xf0]  ;;  %v1748_v33 = vor.u32 %v2354_v27, %v1745_v28  ;;  %v2392_v23 = vld [vmem:[#allocation5 + $0x214] sm:$0xf0] }
  0x36   :  { %v1844_v34 = vor.u32 %v2378_v29, %v1841_v30  ;;  %v2351_v35 = vld [vmem:[#allocation5 + $0x64] sm:$0xf]  ;;  %v1733_v36 = vld [vmem:[#allocation5 + $0x70] sm:$0xf0] }
  0x37   :  { %971 = vmatpush.bf16.msra.mxu0 %v1796_v51  ;;  %984 = vmatpush.bf16.msra.mxu1 %v1892_v52  ;;  %v2375_v37 = vld [vmem:[#allocation5 + $0x164] sm:$0xf]  ;;  %v1736_v38 = vor.u32 %v2351_v35, %v1733_v36  ;;  %v1829_v39 = vld [vmem:[#allocation5 + $0x170] sm:$0xf0]  ;;  %v2365_v35 = vld [vmem:[#allocation5 + $0xf4] sm:$0xf0] }
  0x38   :  { %997 = vmatpush.bf16.msra.mxu2 %v1988_v59  ;;  %1010 = vmatpush.bf16.msra.mxu3 %v2084_v60  ;;  %v1832_v40 = vor.u32 %v2375_v37, %v1829_v39  ;;  %v2402_v41 = vld [vmem:[#allocation5 + $0x284] sm:$0xf]  ;;  %v1937_v42 = vld [vmem:[#allocation5 + $0x290] sm:$0xf0]  ;;  %v1883_v36 = vld [vmem:[#allocation5 + $0x1e8] sm:$0xf] }
  0x39   :  { %v1940_v43 = vor.u32 %v2402_v41, %v1937_v42  ;;  %v2426_v44 = vld [vmem:[#allocation5 + $0x384] sm:$0xf]  ;;  %v2033_v45 = vld [vmem:[#allocation5 + $0x390] sm:$0xf0]  ;;  %v2389_v37 = vld [vmem:[#allocation5 + $0x1f4] sm:$0xf0] }
  0x3a   :  { %v2036_v46 = vor.u32 %v2426_v44, %v2033_v45  ;;  %v2348_v47 = vld [vmem:[#allocation5 + $0x44] sm:$0xf]  ;;  %v1721_v48 = vld [vmem:[#allocation5 + $0x50] sm:$0xf0]  ;;  %v2416_v41 = vld [vmem:[#allocation5 + $0x314] sm:$0xf0] }
  0x3b   :  { %972 = vmatpush.bf16.msra.mxu0 %v1784_v1  ;;  %985 = vmatpush.bf16.msra.mxu1 %v1880_v2  ;;  %v2372_v49 = vld [vmem:[#allocation5 + $0x144] sm:$0xf]  ;;  %v1724_v50 = vor.u32 %v2348_v47, %v1721_v48  ;;  %v1817_v51 = vld [vmem:[#allocation5 + $0x150] sm:$0xf0]  ;;  %v2087_v44 = vld [vmem:[#allocation5 + $0x408] sm:$0xf]  ;;  %v1884_v48 = vor.u32 %v2389_v37, %v1883_v36 }
  0x3c   :  { %998 = vmatpush.bf16.msra.mxu2 %v1976_v7  ;;  %1011 = vmatpush.bf16.msra.mxu3 %v2072_v8  ;;  %v1820_v52 = vor.u32 %v2372_v49, %v1817_v51  ;;  %v2399_v53 = vld [vmem:[#allocation5 + $0x264] sm:$0xf]  ;;  %v1925_v54 = vld [vmem:[#allocation5 + $0x270] sm:$0xf0]  ;;  %v2440_v45 = vld [vmem:[#allocation5 + $0x414] sm:$0xf0] }
  0x3d   :  { %v2423_v55 = vld [vmem:[#allocation5 + $0x364] sm:$0xf]  ;;  %v1928_v56 = vor.u32 %v2399_v53, %v1925_v54  ;;  %v2021_v57 = vld [vmem:[#allocation5 + $0x370] sm:$0xf0]  ;;  %v2362_v49 = vld [vmem:[#allocation5 + $0xd4] sm:$0xf0] }
  0x3e   :  { %v2024_v58 = vor.u32 %v2423_v55, %v2021_v57  ;;  %v2345_v59 = vld [vmem:[#allocation5 + $0x24] sm:$0xf]  ;;  %v1709_v60 = vld [vmem:[#allocation5 + $0x30] sm:$0xf0]  ;;  %v2386_v51 = vld [vmem:[#allocation5 + $0x1d4] sm:$0xf0]  ;;  %v2088_v57 = vor.u32 %v2440_v45, %v2087_v44 }
  0x3f   :  { %973 = vmatpush.bf16.msra.mxu0 %v1772_v13  ;;  %986 = vmatpush.bf16.msra.mxu1 %v1868_v14  ;;  %v1712_v61 = vor.u32 %v2345_v59, %v1709_v60  ;;  %v2369_v62 = vld [vmem:[#allocation5 + $0x124] sm:$0xf]  ;;  %v1805_v63 = vld [vmem:[#allocation5 + $0x130] sm:$0xf0]  ;;  %v1979_v59 = vld [vmem:[#allocation5 + $0x2e8] sm:$0xf] }
  0x40   :  { %999 = vmatpush.bf16.msra.mxu2 %v1964_v19  ;;  %1012 = vmatpush.bf16.msra.mxu3 %v2060_v20  ;;  %v1808_v0 = vor.u32 %v2369_v62, %v1805_v63  ;;  %v2396_v1 = vld [vmem:[#allocation5 + $0x244] sm:$0xf]  ;;  %v1913_v2 = vld [vmem:[#allocation5 + $0x250] sm:$0xf0]  ;;  %v1799_v20 = vld [vmem:[#allocation5 + $0x108] sm:$0xf] }
  0x41   :  { %v2420_v3 = vld [vmem:[#allocation5 + $0x344] sm:$0xf]  ;;  %v1916_v4 = vor.u32 %v2396_v1, %v1913_v2  ;;  %v2009_v5 = vld [vmem:[#allocation5 + $0x350] sm:$0xf0]  ;;  %v1800_v30 = vor.u32 %v2368_v21, %v1799_v20  ;;  %v2413_v60 = vld [vmem:[#allocation5 + $0x2f4] sm:$0xf0] }
  0x42   :  { %v2012_v6 = vor.u32 %v2420_v3, %v2009_v5  ;;  %v2393_v7 = vld [vmem:[#allocation5 + $0x224] sm:$0xf]  ;;  %v1901_v8 = vld [vmem:[#allocation5 + $0x230] sm:$0xf0]  ;;  %v2437_v1 = vld [vmem:[#allocation5 + $0x3f4] sm:$0xf0] }
  0x43   :  { %974 = vmatpush.bf16.msra.mxu0 %v1760_v25  ;;  %987 = vmatpush.bf16.msra.mxu1 %v1856_v26  ;;  %v2417_v9 = vld [vmem:[#allocation5 + $0x324] sm:$0xf]  ;;  %v1904_v10 = vor.u32 %v2393_v7, %v1901_v8  ;;  %v1997_v11 = vld [vmem:[#allocation5 + $0x330] sm:$0xf0]  ;;  %v1763_v2 = vld [vmem:[#allocation5 + $0xa8] sm:$0xf] }
  0x44   :  { %1000 = vmatpush.bf16.msra.mxu2 %v1952_v31  ;;  %1013 = vmatpush.bf16.msra.mxu3 %v2048_v32  ;;  %v2000_v12 = vor.u32 %v2417_v9, %v1997_v11  ;;  %v58_v13 = vld [vmem:[#allocation7] ss:$8 sm:$0xf]  ;;  %v1896_v31 = vor.u32 %v2392_v23, %v1895_v22 }
  0x45   :  { %v292_v14 = vperm.slane %v58_v13, 0  ;;  %v293_v15 = vperm.slane %v58_v13, 1  ;;  %v294_v26 = vperm.slane %v58_v13, 2  ;;  %v295_v27 = vperm.slane %v58_v13, 3  ;;  %v1787_v32 = vld [vmem:[#allocation5 + $0xe8] sm:$0xf] }
  0x46   :  { %v1788_v47 = vor.u32 %v2365_v35, %v1787_v32  ;;  %v2359_v3 = vld [vmem:[#allocation5 + $0xb4] sm:$0xf0]  ;;  %v1967_v8 = vld [vmem:[#allocation5 + $0x2c8] sm:$0xf] }
  0x47   :  { %975 = vmatpush.bf16.msra.mxu0 %v1748_v33  ;;  %988 = vmatpush.bf16.msra.mxu1 %v1844_v34  ;;  %v2383_v5 = vld [vmem:[#allocation5 + $0x1b4] sm:$0xf0]  ;;  %v1764_v9 = vor.u32 %v2359_v3, %v1763_v2  ;;  %v1955_v20 = vld [vmem:[#allocation5 + $0x2a8] sm:$0xf] }
  0x48   :  { %1001 = vmatpush.bf16.msra.mxu2 %v1940_v43  ;;  %1014 = vmatpush.bf16.msra.mxu3 %v2036_v46  ;;  %v1775_v46 = vld [vmem:[#allocation5 + $0xc8] sm:$0xf]  ;;  %v2410_v11 = vld [vmem:[#allocation5 + $0x2d4] sm:$0xf0] }
  0x49   :  { %v2434_v13 = vld [vmem:[#allocation5 + $0x3d4] sm:$0xf0]  ;;  %v2051_v22 = vld [vmem:[#allocation5 + $0x3a8] sm:$0xf] }
  0x4a   :  { %v2407_v21 = vld [vmem:[#allocation5 + $0x2b4] sm:$0xf0]  ;;  %v1943_v32 = vld [vmem:[#allocation5 + $0x288] sm:$0xf] }
  0x4b   :  { %976 = vmatpush.bf16.msra.mxu0 %v1736_v38  ;;  %989 = vmatpush.bf16.msra.mxu1 %v1832_v40  ;;  %v1991_v40 = vld [vmem:[#allocation5 + $0x308] sm:$0xf]  ;;  %v2431_v23 = vld [vmem:[#allocation5 + $0x3b4] sm:$0xf0] }
  0x4c   :  { %1002 = vmatpush.bf16.msra.mxu2 %v1928_v56  ;;  %1015 = vmatpush.bf16.msra.mxu3 %v2024_v58  ;;  %v1992_v54 = vor.u32 %v2416_v41, %v1991_v40  ;;  %v1776_v58 = vor.u32 %v2362_v49, %v1775_v46  ;;  %v2404_v35 = vld [vmem:[#allocation5 + $0x294] sm:$0xf0]  ;;  %v2039_v36 = vld [vmem:[#allocation5 + $0x388] sm:$0xf] }
  0x4d   :  { %v2428_v37 = vld [vmem:[#allocation5 + $0x394] sm:$0xf0]  ;;  %v1727_v40 = vld [vmem:[#allocation5 + $0x48] sm:$0xf]  ;;  %v1944_v44 = vor.u32 %v2404_v35, %v1943_v32  ;;  %v2455_v32 = vld [vmem:[#allocation5 + $0x504] sm:$0xf] }
  0x4e   :  { %v2350_v41 = vld [vmem:[#allocation5 + $0x54] sm:$0xf0]  ;;  %v2040_v45 = vor.u32 %v2428_v37, %v2039_v36  ;;  %v1931_v46 = vld [vmem:[#allocation5 + $0x268] sm:$0xf]  ;;  %v2149_v35 = vld [vmem:[#allocation5 + $0x510] sm:$0xf0] }
  0x4f   :  { %977 = vmatpush.bf16.msra.mxu0 %v1724_v50  ;;  %990 = vmatpush.bf16.msra.mxu1 %v1820_v52  ;;  %v1871_v50 = vld [vmem:[#allocation5 + $0x1c8] sm:$0xf]  ;;  %v2425_v49 = vld [vmem:[#allocation5 + $0x374] sm:$0xf0]  ;;  %v2152_v37 = vor.u32 %v2455_v32, %v2149_v35 }
  0x50   :  { %1003 = vmatpush.bf16.msra.mxu2 %v1916_v4  ;;  %1016 = vmatpush.bf16.msra.mxu3 %v2012_v6  ;;  %v1872_v63 = vor.u32 %v2386_v51, %v1871_v50  ;;  %v1859_v4 = vld [vmem:[#allocation5 + $0x1a8] sm:$0xf]  ;;  %v1980_v6 = vor.u32 %v2413_v60, %v1979_v59  ;;  %v1728_v50 = vor.u32 %v2350_v41, %v1727_v40  ;;  %v2398_v59 = vld [vmem:[#allocation5 + $0x254] sm:$0xf0] }
  0x51   :  { %v2015_v60 = vld [vmem:[#allocation5 + $0x348] sm:$0xf] }
  0x53   :  { %978 = vmatpush.bf16.msra.mxu0 %v1712_v61  ;;  %991 = vmatpush.bf16.msra.mxu1 %v1808_v0  ;;  %v2075_v0 = vld [vmem:[#allocation5 + $0x3e8] sm:$0xf] }
  0x54   :  { %1004 = vmatpush.bf16.msra.mxu2 %v1904_v10  ;;  %1017 = vmatpush.bf16.msra.mxu3 %v2000_v12  ;;  %v2076_v7 = vor.u32 %v2437_v1, %v2075_v0  ;;  %v1860_v10 = vor.u32 %v2383_v5, %v1859_v4  ;;  %v2063_v12 = vld [vmem:[#allocation5 + $0x3c8] sm:$0xf]  ;;  %v2395_v5 = vld [vmem:[#allocation5 + $0x234] sm:$0xf0] }
  0x55   :  { %v1907_v4 = vld [vmem:[#allocation5 + $0x228] sm:$0xf] }
  0x92   :  { %v321_v16 = vpop.f32.mrf.mxu0  ;;  %v341_v17 = vpop.f32.mrf.mxu1 }
  0x93   :  { %v322_v18 = vadd.f32 %v321_v16, %v292_v14  ;;  %v342_v19 = vadd.f32 %v341_v17, %v293_v15  ;;  %v1751_v14 = vld [vmem:[#allocation5 + $0x88] sm:$0xf]  ;;  %v2356_v15 = vld [vmem:[#allocation5 + $0x94] sm:$0xf0] }
  0x94   :  { %v1847_v16 = vld [vmem:[#allocation5 + $0x188] sm:$0xf]  ;;  %v2380_v17 = vld [vmem:[#allocation5 + $0x194] sm:$0xf0] }
  0x95   :  { %vm384_vm1 = vcmp.gt.f32.partialorder %v322_v18, 0.0  ;;  %v388_v24 = vmul.f32 0.01, %v322_v18  ;;  %vm385_vm2 = vcmp.gt.f32.partialorder %v342_v19, 0.0  ;;  %v389_v25 = vmul.f32 0.01, %v342_v19 }
  0x97   :  { %v392_v28 = vsel %vm384_vm1, %v322_v18, %v388_v24  ;;  %v393_v29 = vsel %vm385_vm2, %v342_v19, %v389_v25  ;;  %v1968_v18 = vor.u32 %v2410_v11, %v1967_v8  ;;  %v2064_v19 = vor.u32 %v2434_v13, %v2063_v12  ;;  %v2686_v12 = vld [vmem:[#allocation7 + $0x1] ss:$8 sm:$0x7] }
  0x98   :  { %v2666_v33 = vpack.c.bf16 %v392_v28, %v392_v28  ;;  %v2668_v34 = vpack.c.bf16 %v393_v29, %v393_v29  ;;  %v1752_v24 = vor.u32 %v2356_v15, %v1751_v14  ;;  %v1848_v25 = vor.u32 %v2380_v17, %v1847_v16  ;;  %v1835_v28 = vld [vmem:[#allocation5 + $0x168] sm:$0xf]  ;;  %v2377_v29 = vld [vmem:[#allocation5 + $0x174] sm:$0xf0]  ;;  %v2147_v13 = vld [vmem:[#allocation5 + $0x500] sm:$0xf] }
  0x99   :  { %v361_v38 = vpop.f32.mrf.mxu2  ;;  %v381_v39 = vpop.f32.mrf.mxu3  ;;  %v1908_v8 = vor.u32 %v2395_v5, %v1907_v4  ;;  %v2456_v14 = vld [vmem:[#allocation5 + $0x50c] sm:$0xf0]  ;;  %v401_v16 = vperm.slane %v2686_v12, 0  ;;  %v2631_v17 = vmov 8.0  }
  0x9a   :  { %v362_v42 = vadd.f32 %v361_v38, %v294_v26  ;;  %v382_v43 = vadd.f32 %v381_v39, %v295_v27  ;;  %927 = vmatmul.bf16.vlgmr.msrb.gmra.mxu0 %v2666_v33  ;;  %940 = vmatmul.bf16.vlgmr.msrb.gmra.mxu1 %v2668_v34  ;;  %v1739_v26 = vld [vmem:[#allocation5 + $0x68] sm:$0xf]  ;;  %v2353_v27 = vld [vmem:[#allocation5 + $0x74] sm:$0xf0]  ;;  %v1836_v39 = vor.u32 %v2377_v29, %v1835_v28  ;;  %2512 = vrcp.f32 %v2631_v17  ;;  %v2123_v29 = vld [vmem:[#allocation5 + $0x4a0] sm:$0xf] }
  0x9b   :  { %1023 = vmatpush.bf16.msrb.mxu0 %v1800_v30  ;;  %1036 = vmatpush.bf16.msrb.mxu1 %v1896_v31  ;;  %v1956_v30 = vor.u32 %v2407_v21, %v1955_v20  ;;  %v2052_v31 = vor.u32 %v2431_v23, %v2051_v22  ;;  %v1740_v38 = vor.u32 %v2353_v27, %v1739_v26  ;;  %v2452_v21 = vld [vmem:[#allocation5 + $0x4cc] sm:$0xf0]  ;;  %v2449_v17 = vld [vmem:[#allocation5 + $0x4a4] sm:$0xf] }
  0x9c   :  { %vm386_vm3 = vcmp.gt.f32.partialorder %v362_v42, 0.0  ;;  %v390_v52 = vmul.f32 0.01, %v362_v42  ;;  %vm387_vm4 = vcmp.gt.f32.partialorder %v382_v43, 0.0  ;;  %v391_v53 = vmul.f32 0.01, %v382_v43 }
  0x9d   :  { %v2148_v15 = vor.u32 %v2456_v14, %v2147_v13  ;;  %v2195_v13 = vld [vmem:[#allocation5 + $0x5c0] sm:$0xf] }
  0x9e   :  { %v394_v55 = vsel %vm386_vm3, %v362_v42, %v390_v52  ;;  %v395_v56 = vsel %vm387_vm4, %v382_v43, %v391_v53  ;;  %v1823_v42 = vld [vmem:[#allocation5 + $0x148] sm:$0xf]  ;;  %v2374_v43 = vld [vmem:[#allocation5 + $0x154] sm:$0xf0] }
  0x9f   :  { %1024 = vmatpush.bf16.msrb.mxu0 %v1788_v47  ;;  %1037 = vmatpush.bf16.msrb.mxu1 %v1884_v48  ;;  %v2672_v61 = vpack.c.bf16 %v394_v55, %v394_v55  ;;  %v2674_v62 = vpack.c.bf16 %v395_v56, %v395_v56  ;;  %v2401_v47 = vld [vmem:[#allocation5 + $0x274] sm:$0xf0]  ;;  %v2027_v48 = vld [vmem:[#allocation5 + $0x368] sm:$0xf]  ;;  %v1824_v51 = vor.u32 %v2374_v43, %v1823_v42  ;;  %v2115_v42 = vld [vmem:[#allocation5 + $0x480] sm:$0xf] }
  0xa0   :  { %v1715_v52 = vld [vmem:[#allocation5 + $0x28] sm:$0xf]  ;;  %v2347_v53 = vld [vmem:[#allocation5 + $0x34] sm:$0xf0]  ;;  %v1932_v56 = vor.u32 %v2401_v47, %v1931_v46  ;;  %v2689_v22 = vpop.eup %2512  ;;  %v2448_v43 = vld [vmem:[#allocation5 + $0x48c] sm:$0xf0] }
  0xa1   :  { %953 = vmatmul.bf16.vlgmr.msrb.gmra.mxu2 %v2672_v61  ;;  %966 = vmatmul.bf16.vlgmr.msrb.gmra.mxu3 %v2674_v62  ;;  %v2371_v55 = vld [vmem:[#allocation5 + $0x134] sm:$0xf0]  ;;  %v1716_v0 = vor.u32 %v2347_v53, %v1715_v52  ;;  %v1103_v28 = vmul.f32 8.0, %v2689_v22  ;;  %v402_v47 = vperm.slane %v2686_v12, 1  ;;  %vm1107_vm6 = vweird.f32 %v2689_v22 }
  0xa2   :  { %1049 = vmatpush.bf16.msrb.mxu2 %v1992_v54  ;;  %1062 = vmatpush.bf16.msrb.mxu3 %v2088_v57  ;;  %v1811_v54 = vld [vmem:[#allocation5 + $0x128] sm:$0xf]  ;;  %v2028_v57 = vor.u32 %v2425_v49, %v2027_v48  ;;  %v2116_v48 = vor.u32 %v2448_v43, %v2115_v42  ;;  %v2179_v43 = vld [vmem:[#allocation5 + $0x580] sm:$0xf] }
  0xa3   :  { %1025 = vmatpush.bf16.msrb.mxu0 %v1776_v58  ;;  %1038 = vmatpush.bf16.msrb.mxu1 %v1872_v63  ;;  %v1919_v58 = vld [vmem:[#allocation5 + $0x248] sm:$0xf]  ;;  %v2422_v63 = vld [vmem:[#allocation5 + $0x354] sm:$0xf0]  ;;  %v1812_v1 = vor.u32 %v2371_v55, %v1811_v54  ;;  %v1104_v41 = vsub.f32 1.0, %v1103_v28 }
  0xa4   :  { %v1920_v2 = vor.u32 %v2398_v59, %v1919_v58  ;;  %v2016_v3 = vor.u32 %v2422_v63, %v2015_v60  ;;  %v2446_v58 = vld [vmem:[#allocation5 + $0x46c] sm:$0xf0]  ;;  %v2203_v59 = vld [vmem:[#allocation5 + $0x5e0] sm:$0xf] }
  0xa6   :  { %1050 = vmatpush.bf16.msrb.mxu2 %v1980_v6  ;;  %1063 = vmatpush.bf16.msrb.mxu3 %v2076_v7  ;;  %v2003_v6 = vld [vmem:[#allocation5 + $0x328] sm:$0xf]  ;;  %v2419_v7 = vld [vmem:[#allocation5 + $0x334] sm:$0xf0] }
  0xa7   :  { %1026 = vmatpush.bf16.msrb.mxu0 %v1764_v9  ;;  %1039 = vmatpush.bf16.msrb.mxu1 %v1860_v10  ;;  %v2004_v9 = vor.u32 %v2419_v7, %v2003_v6 }
  0xaa   :  { %1051 = vmatpush.bf16.msrb.mxu2 %v1968_v18  ;;  %1064 = vmatpush.bf16.msrb.mxu3 %v2064_v19 }
  0xab   :  { %979 = vmatmul.bf16.vlgmr.msra.gmra.mxu0 %v2666_v33  ;;  %992 = vmatmul.bf16.vlgmr.msra.gmra.mxu1 %v2668_v34 }
  0xac   :  { %1027 = vmatpush.bf16.msrb.mxu0 %v1752_v24  ;;  %1040 = vmatpush.bf16.msrb.mxu1 %v1848_v25 }
  0xae   :  { %1052 = vmatpush.bf16.msrb.mxu2 %v1956_v30  ;;  %1065 = vmatpush.bf16.msrb.mxu3 %v2052_v31  ;;  %v2450_v30 = vld [vmem:[#allocation5 + $0x4ac] sm:$0xf0] }
  0xaf   :  { %v2124_v31 = vor.u32 %v2450_v30, %v2123_v29  ;;  %v2466_v29 = vld [vmem:[#allocation5 + $0x5ac] sm:$0xf0]  ;;  %v2447_v30 = vld [vmem:[#allocation5 + $0x484] sm:$0xf] }
  0xb0   :  { %1028 = vmatpush.bf16.msrb.mxu0 %v1740_v38  ;;  %1041 = vmatpush.bf16.msrb.mxu1 %v1836_v39 }
  0xb1   :  { %1005 = vmatmul.bf16.vlgmr.msra.gmra.mxu2 %v2672_v61  ;;  %1018 = vmatmul.bf16.vlgmr.msra.gmra.mxu3 %v2674_v62 }
  0xb2   :  { %1053 = vmatpush.bf16.msrb.mxu2 %v1944_v44  ;;  %1066 = vmatpush.bf16.msrb.mxu3 %v2040_v45  ;;  %v2211_v44 = vld [vmem:[#allocation5 + $0x600] sm:$0xf]  ;;  %v2472_v45 = vld [vmem:[#allocation5 + $0x60c] sm:$0xf0] }
  0xb3   :  { %v2212_v49 = vor.u32 %v2472_v45, %v2211_v44  ;;  %v2464_v45 = vld [vmem:[#allocation5 + $0x58c] sm:$0xf0] }
  0xb4   :  { %1029 = vmatpush.bf16.msrb.mxu0 %v1728_v50  ;;  %1042 = vmatpush.bf16.msrb.mxu1 %v1824_v51  ;;  %v2453_v50 = vld [vmem:[#allocation5 + $0x4e4] sm:$0xf]  ;;  %v2141_v51 = vld [vmem:[#allocation5 + $0x4f0] sm:$0xf0] }
  0xb5   :  { %v2144_v55 = vor.u32 %v2453_v50, %v2141_v51  ;;  %v403_v50 = vperm.slane %v2686_v12, 2  ;;  %v2180_v51 = vor.u32 %v2464_v45, %v2179_v43  ;;  %v2277_v45 = vld [vmem:[#allocation5 + $0x710] sm:$0xf0] }
  0xb6   :  { %1054 = vmatpush.bf16.msrb.mxu2 %v1932_v56  ;;  %1067 = vmatpush.bf16.msrb.mxu3 %v2028_v57  ;;  %v1105_v56 = vmul.f32 %v2689_v22, %v1104_v41  ;;  %v2107_v57 = vld [vmem:[#allocation5 + $0x460] sm:$0xf] }
  0xb7   :  { %v2108_v63 = vor.u32 %v2446_v58, %v2107_v57 }
  0xb8   :  { %1030 = vmatpush.bf16.msrb.mxu0 %v1716_v0  ;;  %1043 = vmatpush.bf16.msrb.mxu1 %v1812_v1  ;;  %v2470_v0 = vld [vmem:[#allocation5 + $0x5ec] sm:$0xf0]  ;;  %v2451_v1 = vld [vmem:[#allocation5 + $0x4c4] sm:$0xf] }
  0xb9   :  { %v2204_v4 = vor.u32 %v2470_v0, %v2203_v59  ;;  %v2171_v59 = vld [vmem:[#allocation5 + $0x560] sm:$0xf] }
  0xba   :  { %1055 = vmatpush.bf16.msrb.mxu2 %v1920_v2  ;;  %1068 = vmatpush.bf16.msrb.mxu3 %v2016_v3  ;;  %v2133_v2 = vld [vmem:[#allocation5 + $0x4d0] sm:$0xf0] }
  0xbb   :  { %1031 = vmatmul.bf16.vlgmr.msrb.gmra.mxu0 %v2666_v33  ;;  %1044 = vmatmul.bf16.vlgmr.msrb.gmra.mxu1 %v2668_v34  ;;  %v2139_v33 = vld [vmem:[#allocation5 + $0x4e0] sm:$0xf]  ;;  %v2454_v34 = vld [vmem:[#allocation5 + $0x4ec] sm:$0xf0]  ;;  %v2136_v5 = vor.u32 %v2451_v1, %v2133_v2  ;;  %v2443_v1 = vld [vmem:[#allocation5 + $0x444] sm:$0xf] }
  0xbc   :  { %1443 = vmatpush.bf16.msra.mxu0 %v2148_v15  ;;  %v2140_v18 = vor.u32 %v2454_v34, %v2139_v33  ;;  %1456 = vmatpush.bf16.msra.mxu1 %v2212_v49  ;;  %v2125_v33 = vld [vmem:[#allocation5 + $0x4b0] sm:$0xf0] }
  0xbd   :  { %v2101_v2 = vld [vmem:[#allocation5 + $0x450] sm:$0xf0] }
  0xbe   :  { %1056 = vmatpush.bf16.msrb.mxu2 %v1908_v8  ;;  %1069 = vmatpush.bf16.msrb.mxu3 %v2004_v9  ;;  %v1106_v9 = vadd.f32 %v2689_v22, %v1105_v56 }
  0xc0   :  { %1444 = vmatpush.bf16.msra.mxu0 %v2140_v18  ;;  %1457 = vmatpush.bf16.msra.mxu1 %v2204_v4  ;;  %v2104_v4 = vor.u32 %v2443_v1, %v2101_v2 }
  0xc1   :  { %1057 = vmatmul.bf16.vlgmr.msrb.gmra.mxu2 %v2672_v61  ;;  %1070 = vmatmul.bf16.vlgmr.msrb.gmra.mxu3 %v2674_v62  ;;  %v2131_v62 = vld [vmem:[#allocation5 + $0x4c0] sm:$0xf] }
  0xc2   :  { %v2132_v23 = vor.u32 %v2452_v21, %v2131_v62  ;;  %1482 = vmatpush.bf16.msra.mxu3 %v2152_v37  ;;  %v2701_v21 = vsel %vm1107_vm6, %v2689_v22, %v1106_v9  ;;  %v2471_v37 = vld [vmem:[#allocation5 + $0x604] sm:$0xf] }
  0xc4   :  { %1445 = vmatpush.bf16.msra.mxu0 %v2132_v23 }
  0xc6   :  { %1483 = vmatpush.bf16.msra.mxu3 %v2144_v55 }
  0xc8   :  { %1446 = vmatpush.bf16.msra.mxu0 %v2124_v31  ;;  %v2117_v31 = vld [vmem:[#allocation5 + $0x490] sm:$0xf0] }
  0xca   :  { %1484 = vmatpush.bf16.msra.mxu3 %v2136_v5  ;;  %v2467_v5 = vld [vmem:[#allocation5 + $0x5c4] sm:$0xf] }
  0xcc   :  { %1447 = vmatpush.bf16.msra.mxu0 %v2116_v48  ;;  %v2109_v48 = vld [vmem:[#allocation5 + $0x470] sm:$0xf0] }
  0xd0   :  { %1448 = vmatpush.bf16.msra.mxu0 %v2108_v63 }
 0x117   :  { %v928_v10 = vpop.f32.mrf.mxu0  ;;  %v941_v11 = vpop.f32.mrf.mxu1 }
 0x118   :  { %v929_v19 = vadd.f32 %v928_v10, %v401_v16  ;;  %v2099_v10 = vld [vmem:[#allocation5 + $0x440] sm:$0xf]  ;;  %v2468_v16 = vld [vmem:[#allocation5 + $0x5cc] sm:$0xf0] }
 0x119   :  { %v2196_v18 = vor.u32 %v2468_v16, %v2195_v13  ;;  %v2163_v13 = vld [vmem:[#allocation5 + $0x540] sm:$0xf] }
 0x11a   :  { %v942_v24 = vadd.f32 %v941_v11, %v929_v19  ;;  %v2444_v11 = vld [vmem:[#allocation5 + $0x44c] sm:$0xf0]  ;;  %v2128_v19 = vor.u32 %v2449_v17, %v2125_v33  ;;  %v2441_v33 = vld [vmem:[#allocation5 + $0x424] sm:$0xf] }
 0x11b   :  { %v2100_v15 = vor.u32 %v2444_v11, %v2099_v10  ;;  %1458 = vmatpush.bf16.msra.mxu1 %v2196_v18 }
 0x11c   :  { %1485 = vmatpush.bf16.msra.mxu3 %v2128_v19 }
 0x11d   :  { %1449 = vmatpush.bf16.msra.mxu0 %v2100_v15 }
 0x11f   :  { %v930_v20 = vpop.f32.mrf.mxu0  ;;  %v943_v61 = vpop.f32.mrf.mxu1 }
 0x124   :  { %v954_v25 = vpop.f32.mrf.mxu2  ;;  %v967_v26 = vpop.f32.mrf.mxu3 }
 0x125   :  { %v955_v27 = vadd.f32 %v954_v25, %v942_v24  ;;  %v2091_v24 = vld [vmem:[#allocation5 + $0x420] sm:$0xf]  ;;  %v2442_v25 = vld [vmem:[#allocation5 + $0x42c] sm:$0xf0] }
 0x126   :  { %v2092_v28 = vor.u32 %v2442_v25, %v2091_v24 }
 0x127   :  { %v968_v36 = vadd.f32 %v967_v26, %v955_v27  ;;  %v2187_v26 = vld [vmem:[#allocation5 + $0x5a0] sm:$0xf] }
 0x128   :  { %v980_v38 = vpop.f32.mrf.mxu0  ;;  %v993_v39 = vpop.f32.mrf.mxu1  ;;  %v2188_v35 = vor.u32 %v2466_v29, %v2187_v26  ;;  %1450 = vmatpush.bf16.msra.mxu0 %v2092_v28  ;;  %v2155_v28 = vld [vmem:[#allocation5 + $0x520] sm:$0xf]  ;;  %v2458_v29 = vld [vmem:[#allocation5 + $0x52c] sm:$0xf0] }
 0x129   :  { %vm1075_vm5 = vcmp.gt.f32.partialorder %v968_v36, 0.0  ;;  %v1078_v40 = vmul.f32 0.01, %v968_v36  ;;  %v981_v3 = vadd.f32 %v980_v38, %v402_v47  ;;  %v2213_v38 = vld [vmem:[#allocation5 + $0x610] sm:$0xf0] }
 0x12a   :  { %v2216_v41 = vor.u32 %v2471_v37, %v2213_v38  ;;  %1459 = vmatpush.bf16.msra.mxu1 %v2188_v35  ;;  %v2445_v47 = vld [vmem:[#allocation5 + $0x464] sm:$0xf]  ;;  %v2275_v35 = vld [vmem:[#allocation5 + $0x700] sm:$0xf] }
 0x12b   :  { %v2692_v46 = vsel %vm1075_vm5, %v968_v36, %v1078_v40  ;;  %v994_v34 = vadd.f32 %v993_v39, %v981_v3  ;;  %v2120_v36 = vor.u32 %v2447_v30, %v2117_v31 }
 0x12c   :  { %v1084_v52 = vrot.slane %v2692_v46, 4  ;;  %v956_v53 = vpop.f32.mrf.mxu2  ;;  %v969_v54 = vpop.f32.mrf.mxu3  ;;  %1495 = vmatpush.bf16.msrb.mxu0 %v2216_v41 }
 0x12d   :  { %1486 = vmatpush.bf16.msra.mxu3 %v2120_v36  ;;  %v2469_v53 = vld [vmem:[#allocation5 + $0x5e4] sm:$0xf]  ;;  %v2205_v54 = vld [vmem:[#allocation5 + $0x5f0] sm:$0xf0]  ;;  %v2488_v36 = vld [vmem:[#allocation5 + $0x70c] sm:$0xf0] }
 0x12e   :  { %v1085_v60 = vadd.f32 %v1084_v52, %v2692_v46  ;;  %v2112_v52 = vor.u32 %v2445_v47, %v2109_v48  ;;  %v2208_v58 = vor.u32 %v2469_v53, %v2205_v54  ;;  %1460 = vmatpush.bf16.msra.mxu1 %v2180_v51  ;;  %v2276_v38 = vor.u32 %v2488_v36, %v2275_v35  ;;  %v2486_v53 = vld [vmem:[#allocation5 + $0x6ec] sm:$0xf0]  ;;  %v2461_v54 = vld [vmem:[#allocation5 + $0x564] sm:$0xf] }
 0x130   :  { %v1086_v6 = vrot.slane %v1085_v60, 2  ;;  %v982_v7 = vpop.f32.mrf.mxu0  ;;  %v995_v8 = vpop.f32.mrf.mxu1  ;;  %1496 = vmatpush.bf16.msrb.mxu0 %v2208_v58  ;;  %1469 = vmatpush.bf16.msra.mxu2 %v2276_v38  ;;  %v2269_v58 = vld [vmem:[#allocation5 + $0x6f0] sm:$0xf0] }
 0x131   :  { %1487 = vmatpush.bf16.msra.mxu3 %v2112_v52  ;;  %v2267_v52 = vld [vmem:[#allocation5 + $0x6e0] sm:$0xf]  ;;  %v2245_v38 = vld [vmem:[#allocation5 + $0x690] sm:$0xf0] }
 0x132   :  { %v1087_v14 = vadd.f32 %v1086_v6, %v1085_v60  ;;  %v2462_v60 = vld [vmem:[#allocation5 + $0x56c] sm:$0xf0]  ;;  %v2197_v6 = vld [vmem:[#allocation5 + $0x5d0] sm:$0xf0] }
 0x133   :  { %v2172_v12 = vor.u32 %v2462_v60, %v2171_v59  ;;  %v2200_v11 = vor.u32 %v2467_v5, %v2197_v6  ;;  %v2484_v5 = vld [vmem:[#allocation5 + $0x6cc] sm:$0xf0] }
 0x134   :  { %v1088_v20 = vrot.slane %v1087_v14, 1  ;;  %v1006_v61 = vpop.f32.mrf.mxu2  ;;  %v1019_v62 = vpop.f32.mrf.mxu3 }
 0x135   :  { %v1007_v23 = vadd.f32 %v1006_v61, %v994_v34  ;;  %1461 = vmatpush.bf16.msra.mxu1 %v2172_v12  ;;  %1488 = vmatpush.bf16.msra.mxu3 %v2104_v4  ;;  %v2093_v34 = vld [vmem:[#allocation5 + $0x430] sm:$0xf0]  ;;  %v2259_v4 = vld [vmem:[#allocation5 + $0x6c0] sm:$0xf] }
 0x136   :  { %v1089_v27 = vadd.f32 %v1088_v20, %v1087_v14  ;;  %v2460_v14 = vld [vmem:[#allocation5 + $0x54c] sm:$0xf0]  ;;  %1497 = vmatpush.bf16.msrb.mxu0 %v2200_v11  ;;  %v2096_v19 = vor.u32 %v2441_v33, %v2093_v34  ;;  %v2465_v20 = vld [vmem:[#allocation5 + $0x5a4] sm:$0xf]  ;;  %v2189_v61 = vld [vmem:[#allocation5 + $0x5b0] sm:$0xf0]  ;;  %v2260_v6 = vor.u32 %v2484_v5, %v2259_v4 }
 0x137   :  { %v1020_v32 = vadd.f32 %v1019_v62, %v1007_v23  ;;  %v2164_v17 = vor.u32 %v2460_v14, %v2163_v13  ;;  %v2192_v26 = vor.u32 %v2465_v20, %v2189_v61  ;;  %v2261_v14 = vld [vmem:[#allocation5 + $0x6d0] sm:$0xf0]  ;;  %v2251_v33 = vld [vmem:[#allocation5 + $0x6a0] sm:$0xf]  ;;  %v2482_v34 = vld [vmem:[#allocation5 + $0x6ac] sm:$0xf0] }
 0x138   :  { %v1109_v22 = vmul.f32 %v2701_v21, %v1089_v27  ;;  %v1032_v39 = vpop.f32.mrf.mxu0  ;;  %v1045_v40 = vpop.f32.mrf.mxu1  ;;  %v2157_v20 = vld [vmem:[#allocation5 + $0x530] sm:$0xf0]  ;;  %v2481_v61 = vld [vmem:[#allocation5 + $0x6a4] sm:$0xf] }
 0x139   :  { %vm1076_vm7 = vcmp.gt.f32.partialorder %v1020_v32, 0.0  ;;  %v1079_v42 = vmul.f32 0.01, %v1020_v32  ;;  %v1033_v3 = vadd.f32 %v1032_v39, %v403_v50  ;;  %1462 = vmatpush.bf16.msra.mxu1 %v2164_v17  ;;  %1489 = vmatpush.bf16.msra.mxu3 %v2096_v19  ;;  %v2181_v39 = vld [vmem:[#allocation5 + $0x590] sm:$0xf0] }
 0x13a   :  { %v2705_v44 = vsub.f32 %v2692_v46, %v1109_v22  ;;  %1498 = vmatpush.bf16.msrb.mxu0 %v2192_v26  ;;  %v2463_v22 = vld [vmem:[#allocation5 + $0x584] sm:$0xf]  ;;  %v2253_v26 = vld [vmem:[#allocation5 + $0x6b0] sm:$0xf0] }
 0x13b   :  { %v2707_v49 = vsel %vm1076_vm7, %v1020_v32, %v1079_v42  ;;  %v1046_v18 = vadd.f32 %v1045_v40, %v1033_v3  ;;  %v2156_v32 = vor.u32 %v2458_v29, %v2155_v28  ;;  %v2487_v40 = vld [vmem:[#allocation5 + $0x704] sm:$0xf]  ;;  %v2184_v43 = vor.u32 %v2463_v22, %v2181_v39  ;;  %v2229_v4 = vld [vmem:[#allocation5 + $0x650] sm:$0xf0] }
 0x13c   :  { %v1115_v55 = vmul.f32 %v2705_v44, %v2705_v44  ;;  %v1090_v56 = vrot.slane %v2707_v49, 4  ;;  %v1008_v46 = vpop.f32.mrf.mxu2  ;;  %v1021_v57 = vpop.f32.mrf.mxu3  ;;  %v2280_v48 = vor.u32 %v2487_v40, %v2277_v45  ;;  %v2457_v19 = vld [vmem:[#allocation5 + $0x524] sm:$0xf]  ;;  %v2256_v28 = vor.u32 %v2481_v61, %v2253_v26  ;;  %v2235_v45 = vld [vmem:[#allocation5 + $0x660] sm:$0xf] }
 0x13d   :  { %1463 = vmatpush.bf16.msra.mxu1 %v2156_v32  ;;  %v2173_v46 = vld [vmem:[#allocation5 + $0x570] sm:$0xf0]  ;;  %v2485_v57 = vld [vmem:[#allocation5 + $0x6e4] sm:$0xf]  ;;  %v2480_v32 = vld [vmem:[#allocation5 + $0x68c] sm:$0xf0] }
 0x13e   :  { %v1118_v63 = vrot.slane %v1115_v55, 4  ;;  %v1091_v0 = vadd.f32 %v1090_v56, %v2707_v49  ;;  %1499 = vmatpush.bf16.msrb.mxu0 %v2184_v43  ;;  %v2268_v56 = vor.u32 %v2486_v53, %v2267_v52  ;;  %v2176_v12 = vor.u32 %v2461_v54, %v2173_v46  ;;  %v2734_v52 = vld [vmem:[#allocation7 + $0x2] ss:$8 sm:$0x7]  ;;  %v2237_v54 = vld [vmem:[#allocation5 + $0x670] sm:$0xf0] }
 0x13f   :  { %v2272_v1 = vor.u32 %v2485_v57, %v2269_v58  ;;  %v2738_v57 = vld [vmem:[#allocation7 + $0x3] ss:$8 sm:$0x7]  ;;  %v1177_v26 = vperm.slane %v2734_v52, 1 }
 0x140   :  { %v1119_v7 = vadd.f32 %v1118_v63, %v1115_v55  ;;  %v1092_v8 = vrot.slane %v1091_v0, 2  ;;  %v1034_v9 = vpop.f32.mrf.mxu0  ;;  %v1047_v10 = vpop.f32.mrf.mxu1  ;;  %1470 = vmatpush.bf16.msra.mxu2 %v2268_v56 }
 0x141   :  { %1508 = vmatpush.bf16.msrb.mxu1 %v2280_v48  ;;  %v2483_v9 = vld [vmem:[#allocation5 + $0x6c4] sm:$0xf] }
 0x142   :  { %v1120_v15 = vrot.slane %v1119_v7, 2  ;;  %v1093_v16 = vadd.f32 %v1092_v8, %v1091_v0  ;;  %1500 = vmatpush.bf16.msrb.mxu0 %v2176_v12  ;;  %v2165_v8 = vld [vmem:[#allocation5 + $0x550] sm:$0xf0]  ;;  %v2477_v48 = vld [vmem:[#allocation5 + $0x664] sm:$0xf] }
 0x143   :  { %v2240_v58 = vor.u32 %v2477_v48, %v2237_v54 }
 0x144   :  { %v1121_v62 = vadd.f32 %v1120_v15, %v1119_v7  ;;  %v1094_v23 = vrot.slane %v1093_v16, 1  ;;  %v1058_v24 = vpop.f32.mrf.mxu2  ;;  %v1071_v25 = vpop.f32.mrf.mxu3  ;;  %v2459_v7 = vld [vmem:[#allocation5 + $0x544] sm:$0xf]  ;;  %1471 = vmatpush.bf16.msra.mxu2 %v2260_v6  ;;  %v2264_v15 = vor.u32 %v2483_v9, %v2261_v14 }
 0x145   :  { %v1059_v27 = vadd.f32 %v1058_v24, %v1046_v18  ;;  %1509 = vmatpush.bf16.msrb.mxu1 %v2272_v1  ;;  %v2168_v13 = vor.u32 %v2459_v7, %v2165_v8  ;;  %v2252_v18 = vor.u32 %v2482_v34, %v2251_v33  ;;  %v1186_v1 = vperm.slane %v2738_v57, 0  ;;  %v2474_v8 = vld [vmem:[#allocation5 + $0x62c] sm:$0xf0]  ;;  %v2473_v9 = vld [vmem:[#allocation5 + $0x624] sm:$0xf] }
 0x146   :  { %v1122_v30 = vrot.slane %v1121_v62, 1  ;;  %v1095_v31 = vadd.f32 %v1094_v23, %v1093_v16 }
 0x147   :  { %v1072_v37 = vadd.f32 %v1071_v25, %v1059_v27  ;;  %1501 = vmatpush.bf16.msrb.mxu0 %v2168_v13  ;;  %v2160_v25 = vor.u32 %v2457_v19, %v2157_v20 }
 0x148   :  { %v1123_v41 = vadd.f32 %v1122_v30, %v1121_v62  ;;  %v1110_v42 = vmul.f32 %v2701_v21, %v1095_v31  ;;  %1472 = vmatpush.bf16.msra.mxu2 %v2252_v18  ;;  %v2243_v31 = vld [vmem:[#allocation5 + $0x680] sm:$0xf] }
 0x149   :  { %vm1077_vm8 = vcmp.gt.f32.partialorder %v1072_v37, 0.0  ;;  %v1080_v47 = vmul.f32 0.01, %v1072_v37  ;;  %1510 = vmatpush.bf16.msrb.mxu1 %v2264_v15  ;;  %v2244_v36 = vor.u32 %v2480_v32, %v2243_v31 }
 0x14a   :  { %v1136_v50 = vmul.f32 %v1123_v41, %v2701_v21  ;;  %v2717_v51 = vsub.f32 %v2707_v49, %v1110_v42 }
 0x14b   :  { %v2719_v55 = vsel %vm1077_vm8, %v1072_v37, %v1080_v47  ;;  %1502 = vmatpush.bf16.msrb.mxu0 %v2160_v25  ;;  %v2479_v37 = vld [vmem:[#allocation5 + $0x684] sm:$0xf]  ;;  %v2478_v47 = vld [vmem:[#allocation5 + $0x66c] sm:$0xf0] }
 0x14c   :  { %v2721_v59 = vadd.f32 1e-05, %v1136_v50  ;;  %v1116_v60 = vmul.f32 %v2717_v51, %v2717_v51  ;;  %v1096_v63 = vrot.slane %v2719_v55, 4  ;;  %v1060_v49 = vpop.f32.mrf.mxu2  ;;  %v1073_v0 = vpop.f32.mrf.mxu3  ;;  %v2248_v40 = vor.u32 %v2479_v37, %v2245_v38  ;;  %1473 = vmatpush.bf16.msra.mxu2 %v2244_v36 }
 0x14d   :  { %1511 = vmatpush.bf16.msrb.mxu1 %v2256_v28  ;;  %v2236_v53 = vor.u32 %v2478_v47, %v2235_v45  ;;  %v2227_v49 = vld [vmem:[#allocation5 + $0x640] sm:$0xf]  ;;  %v2476_v0 = vld [vmem:[#allocation5 + $0x64c] sm:$0xf0] }
 0x14e   :  { %2514 = vrsqrt.f32 %v2721_v59  ;;  %v1124_v2 = vrot.slane %v1116_v60, 4  ;;  %v1097_v3 = vadd.f32 %v1096_v63, %v2719_v55  ;;  %vm1148_vm10 = vweird.f32 %v2721_v59 }
 0x14f   :  { %v1176_v63 = vperm.slane %v2734_v52, 0 }
 0x150   :  { %v1125_v10 = vadd.f32 %v1124_v2, %v1116_v60  ;;  %v1098_v11 = vrot.slane %v1097_v3, 2  ;;  %1474 = vmatpush.bf16.msra.mxu2 %v2236_v53  ;;  %v2228_v2 = vor.u32 %v2476_v0, %v2227_v49  ;;  %v2504_v53 = vld [vmem:[#allocation5 + $0x218] sm:$0xf0]  ;;  %v2307_v49 = vld [vmem:[#allocation5 + $0xec] sm:$0xf] }
 0x151   :  { %1512 = vmatpush.bf16.msrb.mxu1 %v2248_v40  ;;  %v1178_v40 = vperm.slane %v2734_v52, 2  ;;  %v2495_v0 = vld [vmem:[#allocation5 + $0xf8] sm:$0xf0] }
 0x152   :  { %v1126_v16 = vrot.slane %v1125_v10, 2  ;;  %v1099_v17 = vadd.f32 %v1098_v11, %v1097_v3  ;;  %v2475_v3 = vld [vmem:[#allocation5 + $0x644] sm:$0xf]  ;;  %v2221_v11 = vld [vmem:[#allocation5 + $0x630] sm:$0xf0] }
 0x153   :  { %v2232_v7 = vor.u32 %v2475_v3, %v2229_v4  ;;  %v2224_v15 = vor.u32 %v2473_v9, %v2221_v11  ;;  %v2303_v3 = vld [vmem:[#allocation5 + $0xcc] sm:$0xf] }
 0x154   :  { %v2515_v62 = vpop.eup %2514  ;;  %v1127_v23 = vadd.f32 %v1126_v16, %v1125_v10  ;;  %v1100_v24 = vrot.slane %v1099_v17, 1  ;;  %1475 = vmatpush.bf16.msra.mxu2 %v2228_v2  ;;  %v2501_v2 = vld [vmem:[#allocation5 + $0x1b8] sm:$0xf0]  ;;  %v2299_v9 = vld [vmem:[#allocation5 + $0xac] sm:$0xf] }
 0x155   :  { %v1143_v27 = vmul.f32 %v2515_v62, %v2721_v59  ;;  %vm1149_vm9 = vweird.f32 %v2515_v62  ;;  %1513 = vmatpush.bf16.msrb.mxu1 %v2240_v58  ;;  %v2219_v59 = vld [vmem:[#allocation5 + $0x620] sm:$0xf]  ;;  %v2323_v11 = vld [vmem:[#allocation5 + $0x16c] sm:$0xf] }
 0x156   :  { %v1128_v29 = vrot.slane %v1127_v23, 1  ;;  %v1101_v30 = vadd.f32 %v1100_v24, %v1099_v17  ;;  %vm1150_vm11 = vmor %vm1148_vm10, %vm1149_vm9  ;;  %v2220_v10 = vor.u32 %v2474_v8, %v2219_v59  ;;  %v2500_v59 = vld [vmem:[#allocation5 + $0x198] sm:$0xf0] }
 0x157   :  { %v1144_v35 = vmul.f32 %v2515_v62, %v1143_v27 }
 0x158   :  { %v1129_v22 = vadd.f32 %v1128_v29, %v1127_v23  ;;  %v1111_v39 = vmul.f32 %v2701_v21, %v1101_v30  ;;  %1476 = vmatpush.bf16.msra.mxu2 %v2220_v10  ;;  %v1187_v29 = vperm.slane %v2738_v57, 1  ;;  %v2493_v10 = vld [vmem:[#allocation5 + $0xb8] sm:$0xf0] }
 0x159   :  { %v1145_v41 = vmul.f32 0.5, %v1144_v35  ;;  %1514 = vmatpush.bf16.msrb.mxu1 %v2232_v7  ;;  %v2327_v7 = vld [vmem:[#allocation5 + $0x18c] sm:$0xf] }
 0x15a   :  { %v1137_v42 = vmul.f32 %v1129_v22, %v2701_v21  ;;  %v2732_v43 = vsub.f32 %v2719_v55, %v1111_v39  ;;  %v2328_v8 = vor.u32 %v2500_v59, %v2327_v7 }
 0x15b   :  { %v1146_v50 = vsub.f32 1.5, %v1145_v41 }
 0x15c   :  { %v1140_v56 = vadd.f32 1e-05, %v1137_v42  ;;  %v1117_v46 = vmul.f32 %v2732_v43, %v2732_v43  ;;  %v1188_v42 = vperm.slane %v2738_v57, 2 }
 0x15d   :  { %v1147_v60 = vmul.f32 %v2515_v62, %v1146_v50  ;;  %1515 = vmatpush.bf16.msrb.mxu1 %v2224_v15  ;;  %v2343_v50 = vld [vmem:[#allocation5 + $0x20c] sm:$0xf] }
 0x15e   :  { %2516 = vrsqrt.f32 %v1140_v56  ;;  %v1130_v55 = vrot.slane %v1117_v46, 4  ;;  %vm1158_vm13 = vweird.f32 %v1140_v56  ;;  %v2344_v54 = vor.u32 %v2504_v53, %v2343_v50  ;;  %v2295_v15 = vld [vmem:[#allocation5 + $0x8c] sm:$0xf] }
 0x15f   :  { %v1151_v12 = vsel %vm1150_vm11, %v2515_v62, %v1147_v60  ;;  %v2311_v60 = vld [vmem:[#allocation5 + $0x10c] sm:$0xf] }
 0x160   :  { %v1172_v5 = vmul.f32 %v1151_v12, %v2705_v44  ;;  %v1131_v6 = vadd.f32 %v1130_v55, %v1117_v46  ;;  %v2503_v46 = vld [vmem:[#allocation5 + $0x1f8] sm:$0xf0]  ;;  %1638 = vmatpush.bf16.msrb.mxu3 %v2344_v54  ;;  %v2308_v12 = vor.u32 %v2495_v0, %v2307_v49  ;;  %v67_v0 = vld [vmem:[#allocation7 + $0x5] ss:$0 sm:$0xff] }
 0x161   :  { %v2496_v55 = vld [vmem:[#allocation5 + $0x118] sm:$0xf0] }
 0x162   :  { %v1132_v13 = vrot.slane %v1131_v6, 2  ;;  %v1182_v14 = vmul.f32 %v1176_v63, %v1172_v5  ;;  %v2312_v52 = vor.u32 %v2496_v55, %v2311_v60  ;;  %v2335_v63 = vld [vmem:[#allocation5 + $0x1cc] sm:$0xf]  ;;  %v2494_v5 = vld [vmem:[#allocation5 + $0xd8] sm:$0xf0] }
 0x164   :  { %v2517_v16 = vpop.eup %2516  ;;  %v1133_v17 = vadd.f32 %v1132_v13, %v1131_v6  ;;  %v1192_v33 = vadd.f32 %v1186_v1, %v1182_v14  ;;  %1625 = vmatpush.bf16.msrb.mxu2 %v2312_v52  ;;  %v2331_v1 = vld [vmem:[#allocation5 + $0x1ac] sm:$0xf]  ;;  %v2304_v6 = vor.u32 %v2494_v5, %v2303_v3  ;;  %v2300_v13 = vor.u32 %v2493_v10, %v2299_v9  ;;  %v2499_v14 = vld [vmem:[#allocation5 + $0x178] sm:$0xf0] }
 0x165   :  { %v1153_v34 = vmul.f32 %v2517_v16, %v1140_v56  ;;  %vm1159_vm12 = vweird.f32 %v2517_v16  ;;  %v2339_v56 = vld [vmem:[#allocation5 + $0x1ec] sm:$0xf]  ;;  %v2332_v4 = vor.u32 %v2501_v2, %v2331_v1 }
 0x166   :  { %v1134_v18 = vrot.slane %v1133_v17, 1  ;;  %v1195_v19 = vpack.c.bf16 %v1192_v33, %v1192_v33  ;;  %vm1160_vm14 = vmor %vm1158_vm13, %vm1159_vm12  ;;  %v2340_v58 = vor.u32 %v2503_v46, %v2339_v56 }
 0x167   :  { %v1154_v44 = vmul.f32 %v2517_v16, %v1153_v34  ;;  %v2319_v34 = vld [vmem:[#allocation5 + $0x14c] sm:$0xf] }
 0x168   :  { %v1135_v20 = vadd.f32 %v1134_v18, %v1133_v17  ;;  %1451 = vmatmul.bf16.vlgmr.msra.gmra.mxu0 %v1195_v19  ;;  %1490 = vmatmul.bf16.vlgmr.msra.gmra.mxu3 %v1195_v19  ;;  %v2324_v17 = vor.u32 %v2499_v14, %v2323_v11  ;;  %v2498_v18 = vld [vmem:[#allocation5 + $0x158] sm:$0xf0] }
 0x169   :  { %v1155_v61 = vmul.f32 0.5, %v1154_v44  ;;  %1639 = vmatpush.bf16.msrb.mxu3 %v2340_v58  ;;  %1626 = vmatpush.bf16.msrb.mxu2 %v2308_v12  ;;  %v2320_v19 = vor.u32 %v2498_v18, %v2319_v34 }
 0x16a   :  { %v1138_v62 = vmul.f32 %v1135_v20, %v2701_v21  ;;  %v2291_v20 = vld [vmem:[#allocation5 + $0x6c] sm:$0xf] }
 0x16b   :  { %v1156_v23 = vsub.f32 1.5, %v1155_v61  ;;  %v2491_v61 = vld [vmem:[#allocation5 + $0x78] sm:$0xf0] }
 0x16c   :  { %v1141_v24 = vadd.f32 1e-05, %v1138_v62  ;;  %v2292_v62 = vor.u32 %v2491_v61, %v2291_v20 }
 0x16d   :  { %v1157_v25 = vmul.f32 %v2517_v16, %v1156_v23  ;;  %1627 = vmatpush.bf16.msrb.mxu2 %v2304_v6  ;;  %v2315_v23 = vld [vmem:[#allocation5 + $0x12c] sm:$0xf] }
 0x16e   :  { %2518 = vrsqrt.f32 %v1141_v24  ;;  %vm1168_vm0 = vweird.f32 %v1141_v24 }
 0x16f   :  { %v1161_v27 = vsel %vm1160_vm14, %v2517_v16, %v1157_v25  ;;  %v2492_v16 = vld [vmem:[#allocation5 + $0x98] sm:$0xf0] }
 0x170   :  { %v1173_v28 = vmul.f32 %v1161_v27, %v2717_v51  ;;  %v2296_v33 = vor.u32 %v2492_v16, %v2295_v15  ;;  %v2490_v27 = vld [vmem:[#allocation5 + $0x58] sm:$0xf0] }
 0x171   :  { %1628 = vmatpush.bf16.msrb.mxu2 %v2300_v13 }
 0x172   :  { %v1183_v30 = vmul.f32 %v1177_v26, %v1173_v28  ;;  %v2287_v26 = vld [vmem:[#allocation5 + $0x4c] sm:$0xf] }
 0x173   :  { %v2288_v28 = vor.u32 %v2490_v27, %v2287_v26 }
 0x174   :  { %v2519_v31 = vpop.eup %2518  ;;  %v1193_v32 = vadd.f32 %v1187_v29, %v1183_v30 }
 0x175   :  { %v1163_v35 = vmul.f32 %v2519_v31, %v1141_v24  ;;  %vm1169_vm15 = vweird.f32 %v2519_v31  ;;  %1629 = vmatpush.bf16.msrb.mxu2 %v2296_v33  ;;  %v2497_v24 = vld [vmem:[#allocation5 + $0x138] sm:$0xf0] }
 0x176   :  { %v1196_v36 = vpack.c.bf16 %v1193_v32, %v1193_v32  ;;  %vm1170_vm1 = vmor %vm1168_vm0, %vm1169_vm15  ;;  %v2316_v25 = vor.u32 %v2497_v24, %v2315_v23  ;;  %v2489_v32 = vld [vmem:[#allocation5 + $0x38] sm:$0xf0] }
 0x177   :  { %v1164_v37 = vmul.f32 %v2519_v31, %v1163_v35 }
 0x178   :  { %1464 = vmatmul.bf16.vlgmr.msra.gmra.mxu1 %v1196_v36  ;;  %1503 = vmatmul.bf16.vlgmr.msrb.gmra.mxu0 %v1196_v36 }
 0x179   :  { %v1165_v38 = vmul.f32 0.5, %v1164_v37  ;;  %1630 = vmatpush.bf16.msrb.mxu2 %v2292_v62 }
 0x17b   :  { %v1166_v22 = vsub.f32 1.5, %v1165_v38 }
 0x17d   :  { %v1167_v39 = vmul.f32 %v2519_v31, %v1166_v22  ;;  %1631 = vmatpush.bf16.msrb.mxu2 %v2288_v28  ;;  %v66_v22 = vld [vmem:[#allocation7 + $0x4] ss:$8 sm:$0x3]  ;;  %v69_v28 = vld [vmem:[#allocation7 + $0x7] ss:$0 sm:$0xff] }
 0x17f   :  { %v1171_v41 = vsel %vm1170_vm1, %v2519_v31, %v1167_v39  ;;  %v2283_v31 = vld [vmem:[#allocation5 + $0x2c] sm:$0xf] }
 0x180   :  { %v1174_v51 = vmul.f32 %v1171_v41, %v2732_v43  ;;  %v2502_v43 = vld [vmem:[#allocation5 + $0x1d8] sm:$0xf0]  ;;  %v2284_v35 = vor.u32 %v2489_v32, %v2283_v31  ;;  %v1200_v41 = vperm.slane %v66_v22, 1 }
 0x181   :  { %v2336_v57 = vor.u32 %v2502_v43, %v2335_v63 }
 0x182   :  { %v1184_v45 = vmul.f32 %v1178_v40, %v1174_v51  ;;  %1632 = vmatpush.bf16.msrb.mxu2 %v2284_v35 }
 0x183   :  { %1640 = vmatpush.bf16.msrb.mxu3 %v2336_v57 }
 0x184   :  { %v1194_v47 = vadd.f32 %v1188_v42, %v1184_v45  ;;  %v1199_v42 = vperm.slane %v66_v22, 0 }
 0x186   :  { %v1197_v48 = vpack.c.bf16 %v1194_v47, %v1194_v47 }
 0x187   :  { %1641 = vmatpush.bf16.msrb.mxu3 %v2332_v4 }
 0x188   :  { %1477 = vmatmul.bf16.vlgmr.msra.gmra.mxu2 %v1197_v48  ;;  %1516 = vmatmul.bf16.vlgmr.msrb.gmra.mxu1 %v1197_v48 }
 0x18b   :  { %1642 = vmatpush.bf16.msrb.mxu3 %v2328_v8 }
 0x18f   :  { %1643 = vmatpush.bf16.msrb.mxu3 %v2324_v17 }
 0x193   :  { %1644 = vmatpush.bf16.msrb.mxu3 %v2320_v19 }
 0x197   :  { %1645 = vmatpush.bf16.msrb.mxu3 %v2316_v25  ;;  %v68_v25 = vld [vmem:[#allocation7 + $0x6] ss:$0 sm:$0xff] }
 0x1e5   :  { %v1452_v44 = vpop.f32.mrf.mxu0 }
 0x1e6   :  { %v1453_v50 = vadd.f32 %v1452_v44, %v1199_v42 }
 0x1eb   :  { %v1491_v29 = vpop.f32.mrf.mxu3 }
 0x1ec   :  { %v1492_v51 = vadd.f32 %v1491_v29, %v1200_v41 }
 0x1ed   :  { %v1454_v30 = vpop.f32.mrf.mxu0 }
 0x1f3   :  { %v1493_v36 = vpop.f32.mrf.mxu3 }
 0x1f5   :  { %v1465_v37 = vpop.f32.mrf.mxu1  ;;  %v1504_v38 = vpop.f32.mrf.mxu0 }
 0x1f6   :  { %v1505_v45 = vadd.f32 %v1504_v38, %v1492_v51  ;;  %v1466_v54 = vadd.f32 %v1465_v37, %v1453_v50 }
 0x1fd   :  { %v1467_v39 = vpop.f32.mrf.mxu1  ;;  %v1506_v40 = vpop.f32.mrf.mxu0 }
 0x205   :  { %v1517_v47 = vpop.f32.mrf.mxu1 }
 0x206   :  { %v1518_v48 = vadd.f32 %v1517_v47, %v1505_v45 }
 0x208   :  { %vm1522_vm2 = vcmp.gt.f32.partialorder %v1518_v48, 0.0  ;;  %v1524_v53 = vmul.f32 0.01, %v1518_v48 }
 0x20a   :  { %v1526_v56 = vsel %vm1522_vm2, %v1518_v48, %v1524_v53 }
 0x20b   :  { %v1528_v46 = vpack.c.bf16 %v1526_v56, %v1526_v56  ;;  %v1478_v58 = vpop.f32.mrf.mxu2 }
 0x20c   :  { %v1479_v60 = vadd.f32 %v1478_v58, %v1466_v54 }
 0x20d   :  { %v1519_v55 = vpop.f32.mrf.mxu1  ;;  %1646 = vmatmul.bf16.vlgmr.msrb.gmra.mxu3 %v1528_v46 }
 0x20e   :  { %vm1521_vm3 = vcmp.gt.f32.partialorder %v1479_v60, 0.0  ;;  %v1523_v52 = vmul.f32 0.01, %v1479_v60 }
 0x210   :  { %v1525_v63 = vsel %vm1521_vm3, %v1479_v60, %v1523_v52 }
 0x211   :  { %v1527_v43 = vpack.c.bf16 %v1525_v63, %v1525_v63 }
 0x213   :  { %v1480_v57 = vpop.f32.mrf.mxu2  ;;  %1633 = vmatmul.bf16.vlgmr.msrb.gmra.mxu2 %v1527_v43 }
 0x290   :  { %v1647_v49 = vpop.f32.mrf.mxu3 }
 0x296   :  { %v1634_v12 = vpop.f32.mrf.mxu2 }
 0x297   :  { %v1635_v1 = vadd.f32 %v1634_v12, %v67_v0 }
 0x298   :  { %v1649_v2 = vpop.f32.mrf.mxu3 }
 0x299   :  { %v1648_v3 = vadd.f32 %v1647_v49, %v1635_v1 }
 0x29b   :  { %v1651_v4 = vrot.slane %v1648_v3, 4 }
 0x29d   :  { %v1652_v5 = vadd.f32 %v1651_v4, %v1648_v3 }
 0x29e   :  { %v1636_v6 = vpop.f32.mrf.mxu2 }
 0x29f   :  { %v1653_v7 = vrot.slane %v1652_v5, 2 }
 0x2a1   :  { %v1654_v59 = vadd.f32 %v1653_v7, %v1652_v5 }
 0x2a3   :  { %v1655_v8 = vrot.slane %v1654_v59, 1 }
 0x2a5   :  { %v1656_v9 = vadd.f32 %v1655_v8, %v1654_v59 }
 0x2a7   :  { %v1657_v10 = vmul.f32 %v1656_v9, %v2701_v21 }
 0x2a9   :  { %v1658_v11 = vsub.f32 %v1648_v3, %v1657_v10 }
 0x2ab   :  { %v1659_v13 = vmul.f32 %v1658_v11, %v1658_v11 }
 0x2ad   :  { %v1660_v14 = vrot.slane %v1659_v13, 4 }
 0x2af   :  { %v1661_v15 = vadd.f32 %v1660_v14, %v1659_v13 }
 0x2b1   :  { %v1662_v16 = vrot.slane %v1661_v15, 2 }
 0x2b3   :  { %v1663_v17 = vadd.f32 %v1662_v16, %v1661_v15 }
 0x2b5   :  { %v1664_v33 = vrot.slane %v1663_v17, 1 }
 0x2b7   :  { %v1665_v34 = vadd.f32 %v1664_v33, %v1663_v17 }
 0x2b9   :  { %v1666_v18 = vmul.f32 %v1665_v34, %v2701_v21 }
 0x2bb   :  { %v1667_v19 = vadd.f32 1e-05, %v1666_v18 }
 0x2bd   :  { %2520 = vrsqrt.f32 %v1667_v19  ;;  %vm1674_vm5 = vweird.f32 %v1667_v19 }
 0x2c3   :  { %v2521_v44 = vpop.eup %2520 }
 0x2c4   :  { %v1669_v20 = vmul.f32 %v2521_v44, %v1667_v19  ;;  %vm1675_vm4 = vweird.f32 %v2521_v44 }
 0x2c5   :  { %vm1676_vm6 = vmor %vm1674_vm5, %vm1675_vm4 }
 0x2c6   :  { %v1670_v61 = vmul.f32 %v2521_v44, %v1669_v20 }
 0x2c8   :  { %v1671_v62 = vmul.f32 0.5, %v1670_v61 }
 0x2ca   :  { %v1672_v23 = vsub.f32 1.5, %v1671_v62 }
 0x2cc   :  { %v1673_v24 = vmul.f32 %v2521_v44, %v1672_v23 }
 0x2ce   :  { %v1677_v26 = vsel %vm1676_vm6, %v2521_v44, %v1673_v24 }
 0x2cf   :  { %v1678_v27 = vmul.f32 %v1677_v26, %v1658_v11 }
 0x2d1   :  { %v1679_v29 = vmul.f32 %v1678_v27, %v68_v25 }
 0x2d3   :  { %v1680_v30 = vadd.f32 %v1679_v29, %v69_v28 }
 0x2d5   :  { %2522 = vtanh.f32 %v1680_v30 }
 0x2db   :  { %v2523_v21 = vpop.eup %2522 }
 0x2dc   :  { %1682 = vst [vmem:[#allocation8] sm:$0xff] %v2523_v21 }
 0x2dd   :  { %1693 = dma.vmem_to_hbm [thread:$0]  %s1689_s2, 128, %s1691_s30, [#allocation4]  }
 0x2de   :  { %2624 = dma.done.wait [#allocation4], 128  }
 0x2df   :  { %2625 = vsyncadd [#allocation4], 4294967168 }
 0x2e0   :  { %1698 = vsyncpa [#allocation3], 1 }
 0x2e1   :  { %1699 = vsyncpa [#allocation6], 1 }
 0x2e2   :  { %1700 = vsyncpa [#allocation4], 1 }

</bundles_post_ra>
